<compile_context>
chip_gen: v7x
topology: tpu7x:2x2x1
jax: 0.10.0
libtpu: 0.0.40
codegen_flags: <defaults>
</compile_context>

<pallas_src>
import functools
import math

import jax
import jax.numpy as jnp
from jax import lax
from jax.experimental import pallas as pl
from jax.experimental.pallas import tpu as pltpu

# ----------------- tiny synthetic Llama config -----------------
VOCAB = 128
HIDDEN = 64
N_HEADS = 4
N_KV_HEADS = 2
HEAD_DIM = HIDDEN // N_HEADS          # 16
INTERMEDIATE = 128
N_LAYERS = 24                         # LlamaHeadA keeps model.layers[:24]
RMS_EPS = 1e-5
ROPE_BASE = 500000.0                  # Llama-3.1 rope theta

KV_DIM = N_KV_HEADS * HEAD_DIM        # 32
QKV_OUT = HIDDEN + 2 * KV_DIM         # 128 (lane-dense)
GU_OUT = 2 * INTERMEDIATE             # 256 (lane-dense)
REP = N_HEADS // N_KV_HEADS           # GQA repeat factor


# ======================= fused 24-layer kernel =======================

def _rms(x, w):
    # x: (M, H) f32, w: (1, H) f32
    var = jnp.mean(x * x, axis=-1, keepdims=True)
    return x * lax.rsqrt(var + RMS_EPS) * w


def _rope(x_h, cos, sin):
    # x_h: (M, D) f32; rotate_half(x) = concat(-x[:, D/2:], x[:, :D/2])
    half = HEAD_DIM // 2
    x1 = x_h[:, :half]
    x2 = x_h[:, half:]
    rot = jnp.concatenate([-x2, x1], axis=-1)
    return x_h * cos + rot * sin


def _fused_layers_kernel(x_ref, cos_ref, sin_ref, bias_ref,
                         in_norm_ref, wqkv_ref, wo_ref,
                         post_norm_ref, wgu_ref, wd_ref,
                         o_ref, acc_ref, *, scale):
    layer = pl.program_id(0)

    # Initialize the resident activation carry from the embeddings.
    @pl.when(layer == 0)
    def _():
        acc_ref[...] = x_ref[...].astype(jnp.float32)

    x = acc_ref[...]                      # (M, H) f32
    cos = cos_ref[...]                    # (M, D) f32
    sin = sin_ref[...]                    # (M, D) f32
    bias = bias_ref[...]                  # (M, M) additive causal+batch mask

    # ---------------- self-attention block ----------------
    h = _rms(x, in_norm_ref[0])                                   # (M, H) f32
    qkv = jnp.dot(h.astype(jnp.bfloat16), wqkv_ref[0],
                  preferred_element_type=jnp.float32)             # (M, 128)

    k_off = HIDDEN
    v_off = HIDDEN + KV_DIM

    # RoPE on the shared KV heads (computed once per kv head).
    k_rot = []
    v_heads = []
    for g in range(N_KV_HEADS):
        k_h = qkv[:, k_off + g * HEAD_DIM: k_off + (g + 1) * HEAD_DIM]
        v_h = qkv[:, v_off + g * HEAD_DIM: v_off + (g + 1) * HEAD_DIM]
        k_rot.append(_rope(k_h, cos, sin))
        v_heads.append(v_h)

    # Per Q-head attention; all (batch, seq) rows handled at once, with the
    # additive bias enforcing both causality and batch separation.
    outs = []
    for hd in range(N_HEADS):
        g = hd // REP                                             # GQA mapping
        q_h = _rope(qkv[:, hd * HEAD_DIM: (hd + 1) * HEAD_DIM], cos, sin)
        s = lax.dot_general(q_h, k_rot[g], (((1,), (1,)), ((), ())),
                            preferred_element_type=jnp.float32) * scale
        s = s + bias                                              # (M, M)
        m = jnp.max(s, axis=-1, keepdims=True)
        e = jnp.exp(s - m)
        inv = pl.reciprocal(jnp.sum(e, axis=-1, keepdims=True), approx=True)
        p = e * inv
        outs.append(jnp.dot(p, v_heads[g], preferred_element_type=jnp.float32))
    o_attn = jnp.concatenate(outs, axis=-1)                       # (M, H)

    x = x + jnp.dot(o_attn.astype(jnp.bfloat16), wo_ref[0],
                    preferred_element_type=jnp.float32)

    # ---------------- MLP (SwiGLU) block ----------------
    h2 = _rms(x, post_norm_ref[0])
    gu = jnp.dot(h2.astype(jnp.bfloat16), wgu_ref[0],
                 preferred_element_type=jnp.float32)              # (M, 256)
    gate = gu[:, :INTERMEDIATE]
    up = gu[:, INTERMEDIATE:]
    act = gate * lax.logistic(gate) * up                          # SiLU * up
    x = x + jnp.dot(act.astype(jnp.bfloat16), wd_ref[0],
                    preferred_element_type=jnp.float32)

    acc_ref[...] = x
    o_ref[...] = x.astype(o_ref.dtype)


def run_layers(x0, cos_full, sin_full, bias, params):
    M = x0.shape[0]
    scale = 1.0 / math.sqrt(HEAD_DIM)
    return pl.pallas_call(
        functools.partial(_fused_layers_kernel, scale=scale),
        out_shape=jax.ShapeDtypeStruct((M, HIDDEN), jnp.float32),
        grid_spec=pltpu.PrefetchScalarGridSpec(
            num_scalar_prefetch=0,
            grid=(N_LAYERS,),
            in_specs=[
                pl.BlockSpec((M, HIDDEN), lambda l: (0, 0)),                 # x0
                pl.BlockSpec((M, HEAD_DIM), lambda l: (0, 0)),               # cos
                pl.BlockSpec((M, HEAD_DIM), lambda l: (0, 0)),               # sin
                pl.BlockSpec((M, M), lambda l: (0, 0)),                      # mask bias
                pl.BlockSpec((1, 1, HIDDEN), lambda l: (l, 0, 0)),           # input_norm
                pl.BlockSpec((1, HIDDEN, QKV_OUT), lambda l: (l, 0, 0)),     # wqkv
                pl.BlockSpec((1, HIDDEN, HIDDEN), lambda l: (l, 0, 0)),      # wo
                pl.BlockSpec((1, 1, HIDDEN), lambda l: (l, 0, 0)),           # post_norm
                pl.BlockSpec((1, HIDDEN, GU_OUT), lambda l: (l, 0, 0)),      # wgu
                pl.BlockSpec((1, INTERMEDIATE, HIDDEN), lambda l: (l, 0, 0)),# wd
            ],
            out_specs=pl.BlockSpec((M, HIDDEN), lambda l: (0, 0)),
            scratch_shapes=[pltpu.VMEM((M, HIDDEN), jnp.float32)],
        ),
        compiler_params=pltpu.CompilerParams(
            dimension_semantics=("arbitrary",)),   # sequential carry over layers
    )(x0, cos_full, sin_full, bias,
      params["input_norm"], params["wqkv"], params["wo"],
      params["post_norm"], params["wgu"], params["wd"])


# ======================= RoPE (llama3-scaled) glue =======================

def llama3_inv_freq(head_dim, base=ROPE_BASE, factor=8.0,
                    low_freq_factor=1.0, high_freq_factor=4.0,
                    original_max_pos=8192):
    inv_freq = 1.0 / (base ** (jnp.arange(0, head_dim, 2, dtype=jnp.float32) / head_dim))
    low_wav = original_max_pos / low_freq_factor
    high_wav = original_max_pos / high_freq_factor
    wavelen = 2.0 * jnp.pi / inv_freq
    scaled = jnp.where(wavelen > low_wav, inv_freq / factor, inv_freq)
    smooth = (original_max_pos / wavelen - low_freq_factor) / (high_freq_factor - low_freq_factor)
    smoothed = (1.0 - smooth) / factor * inv_freq + smooth * inv_freq
    mid = (wavelen >= high_wav) & (wavelen <= low_wav)
    return jnp.where(mid, smoothed, scaled)


def rope_cos_sin(seq_len):
    inv_freq = llama3_inv_freq(HEAD_DIM)
    pos = jnp.arange(seq_len, dtype=jnp.float32)
    freqs = jnp.outer(pos, inv_freq)                     # (S, D/2)
    emb = jnp.concatenate([freqs, freqs], axis=-1)       # (S, D)
    return jnp.cos(emb), jnp.sin(emb)                    # attention_scaling == 1.0


def causal_batch_bias(batch, seq):
    # Additive mask over flattened (b, s) rows/cols: causal AND same-batch.
    m = batch * seq
    idx = jnp.arange(m, dtype=jnp.int32)
    b_i, s_i = idx // seq, idx % seq
    ok = (b_i[:, None] == b_i[None, :]) & (s_i[None, :] <= s_i[:, None])
    return jnp.where(ok, 0.0, -1e30).astype(jnp.float32)


# ======================= model forward =======================

def llama_head_a(params, input_ids):
    B, S = input_ids.shape
    M = B * S
    # TODO(synk): embedding table gather stays in plain JAX (no clean Pallas
    # equivalent for a small-vocab row gather that beats a jnp take).
    x0 = params["embed"][input_ids].reshape(M, HIDDEN).astype(jnp.float32)
    cos, sin = rope_cos_sin(S)
    cos_full = jnp.tile(cos, (B, 1))                     # (M, D)
    sin_full = jnp.tile(sin, (B, 1))
    bias = causal_batch_bias(B, S)                       # (M, M)
    out = run_layers(x0, cos_full, sin_full, bias, params)
    return out.reshape(B, S, HIDDEN)


# ======================= deterministic params =======================

def init_params(key):
    std = 0.02
    keys = jax.random.split(key, 1 + N_LAYERS)
    embed = std * jax.random.normal(keys[0], (VOCAB, HIDDEN), jnp.float32)
    in_norms, post_norms, wqkvs, wos, wgus, wds = [], [], [], [], [], []
    for li in range(N_LAYERS):
        lk = jax.random.split(keys[1 + li], 9)
        in_norms.append(1.0 + 0.01 * jax.random.normal(lk[0], (1, HIDDEN), jnp.float32))
        post_norms.append(1.0 + 0.01 * jax.random.normal(lk[1], (1, HIDDEN), jnp.float32))
        wq = std * jax.random.normal(lk[2], (HIDDEN, N_HEADS * HEAD_DIM), jnp.float32)
        wk = std * jax.random.normal(lk[3], (HIDDEN, KV_DIM), jnp.float32)
        wv = std * jax.random.normal(lk[4], (HIDDEN, KV_DIM), jnp.float32)
        wqkvs.append(jnp.concatenate([wq, wk, wv], axis=-1))      # (H, 128)
        wos.append(std * jax.random.normal(lk[5], (HIDDEN, HIDDEN), jnp.float32))
        wg = std * jax.random.normal(lk[6], (HIDDEN, INTERMEDIATE), jnp.float32)
        wu = std * jax.random.normal(lk[7], (HIDDEN, INTERMEDIATE), jnp.float32)
        wgus.append(jnp.concatenate([wg, wu], axis=-1))           # (H, 256)
        wds.append(std * jax.random.normal(lk[8], (INTERMEDIATE, HIDDEN), jnp.float32))

    wdtype = jnp.bfloat16   # bf16 weight storage; f32 accumulation in-kernel
    return {
        "embed": embed,                                            # (V, H) f32
        "input_norm": jnp.stack(in_norms),                         # (L, 1, H) f32
        "post_norm": jnp.stack(post_norms),                        # (L, 1, H) f32
        "wqkv": jnp.stack(wqkvs).astype(wdtype),                   # (L, H, 128)
        "wo": jnp.stack(wos).astype(wdtype),                       # (L, H, H)
        "wgu": jnp.stack(wgus).astype(wdtype),                     # (L, H, 256)
        "wd": jnp.stack(wds).astype(wdtype),                       # (L, 128, H)
    }


if __name__ == "__main__":
    root = jax.random.PRNGKey(0)
    pkey, ikey = jax.random.split(root)
    params = init_params(pkey)

    B, S = 2, 8
    input_ids = jax.random.randint(ikey, (B, S), 0, VOCAB, dtype=jnp.int32)

    out = jax.jit(llama_head_a)(params, input_ids)
    out = jax.block_until_ready(out)

    assert out.shape == (B, S, HIDDEN), out.shape
    assert bool(jnp.all(jnp.isfinite(out)))
    print("KERNEL_OK")
</pallas_src>

<mosaic_0001>
module attributes {stable_mosaic.version = 11 : i64} {
  func.func @_fused_layers_kernel(%arg0: i32, %arg1: memref<16x64xf32, #tpu.memory_space<vmem>>, %arg2: memref<16x16xf32, #tpu.memory_space<vmem>>, %arg3: memref<16x16xf32, #tpu.memory_space<vmem>>, %arg4: memref<16x16xf32, #tpu.memory_space<vmem>>, %arg5: memref<1x1x64xf32, #tpu.memory_space<vmem>>, %arg6: memref<1x64x128xbf16, #tpu.memory_space<vmem>>, %arg7: memref<1x64x64xbf16, #tpu.memory_space<vmem>>, %arg8: memref<1x1x64xf32, #tpu.memory_space<vmem>>, %arg9: memref<1x64x256xbf16, #tpu.memory_space<vmem>>, %arg10: memref<1x128x64xbf16, #tpu.memory_space<vmem>>, %arg11: memref<16x64xf32, #tpu.memory_space<vmem>>, %arg12: memref<16x64xf32, #tpu.memory_space<vmem>>) attributes {dimension_semantics = [#tpu.dimension_semantics<arbitrary>], iteration_bounds = array<i64: 24>, scalar_prefetch = 0 : i64, scratch_operands = 1 : i64, tpu.core_type = #tpu.core_type<tc>, window_params = [{pipeline_mode = #tpu.pipeline_mode<synchronous>, transform_indices = @transform_0, window_bounds = array<i64: 16, 64>}, {pipeline_mode = #tpu.pipeline_mode<synchronous>, transform_indices = @transform_1, window_bounds = array<i64: 16, 16>}, {pipeline_mode = #tpu.pipeline_mode<synchronous>, transform_indices = @transform_2, window_bounds = array<i64: 16, 16>}, {pipeline_mode = #tpu.pipeline_mode<synchronous>, transform_indices = @transform_3, window_bounds = array<i64: 16, 16>}, {transform_indices = @transform_4, window_bounds = array<i64: 1, 1, 64>}, {transform_indices = @transform_5, window_bounds = array<i64: 1, 64, 128>}, {transform_indices = @transform_6, window_bounds = array<i64: 1, 64, 64>}, {transform_indices = @transform_7, window_bounds = array<i64: 1, 1, 64>}, {transform_indices = @transform_8, window_bounds = array<i64: 1, 64, 256>}, {transform_indices = @transform_9, window_bounds = array<i64: 1, 128, 64>}, {pipeline_mode = #tpu.pipeline_mode<synchronous>, transform_indices = @transform_10, window_bounds = array<i64: 16, 64>}]} {
    %c0_i32 = arith.constant 0 : i32
    %0 = arith.cmpi eq, %arg0, %c0_i32 : i32
    %1 = arith.extui %0 : i1 to i32
    %c0_i32_0 = arith.constant 0 : i32
    %2 = arith.cmpi ne, %1, %c0_i32_0 : i32
    scf.if %2 {
      %c0_66 = arith.constant 0 : index
      %c0_67 = arith.constant 0 : index
      %181 = vector.load %arg1[%c0_66, %c0_67] : memref<16x64xf32, #tpu.memory_space<vmem>>, vector<16x64xf32>
      %c0_68 = arith.constant 0 : index
      %c0_69 = arith.constant 0 : index
      %182 = vector.load %arg12[%c0_68, %c0_69] : memref<16x64xf32, #tpu.memory_space<vmem>>, vector<16x64xf32>
      tpu.vector_store %arg12[%c0_68, %c0_69], %181 {strides = array<i32>} : memref<16x64xf32, #tpu.memory_space<vmem>>, vector<16x64xf32>,
    } else {
    }
    %c0 = arith.constant 0 : index
    %c0_1 = arith.constant 0 : index
    %3 = vector.load %arg12[%c0, %c0_1] : memref<16x64xf32, #tpu.memory_space<vmem>>, vector<16x64xf32>
    %c0_2 = arith.constant 0 : index
    %c0_3 = arith.constant 0 : index
    %4 = vector.load %arg2[%c0_2, %c0_3] : memref<16x16xf32, #tpu.memory_space<vmem>>, vector<16x16xf32>
    %c0_4 = arith.constant 0 : index
    %c0_5 = arith.constant 0 : index
    %5 = vector.load %arg3[%c0_4, %c0_5] : memref<16x16xf32, #tpu.memory_space<vmem>>, vector<16x16xf32>
    %c0_6 = arith.constant 0 : index
    %c0_7 = arith.constant 0 : index
    %6 = vector.load %arg4[%c0_6, %c0_7] : memref<16x16xf32, #tpu.memory_space<vmem>>, vector<16x16xf32>
    %c0_8 = arith.constant 0 : index
    %c0_9 = arith.constant 0 : index
    %c0_10 = arith.constant 0 : index
    %7 = vector.load %arg5[%c0_8, %c0_9, %c0_10] : memref<1x1x64xf32, #tpu.memory_space<vmem>>, vector<1x1x64xf32>
    %8 = vector.shape_cast %7 : vector<1x1x64xf32> to vector<1x64xf32>
    %9 = arith.mulf %3, %3 : vector<16x64xf32>
    %cst = arith.constant dense<0.000000e+00> : vector<16xf32>
    %10 = vector.multi_reduction <add>, %9, %cst [1] : vector<16x64xf32> to vector<16xf32>
    %11 = vector.shape_cast %10 : vector<16xf32> to vector<16x1xf32>
    %cst_11 = arith.constant 6.400000e+01 : f32
    %12 = vector.broadcast %cst_11 : f32 to vector<16x1xf32>
    %13 = arith.divf %11, %12 : vector<16x1xf32>
    %cst_12 = arith.constant 9.99999974E-6 : f32
    %14 = vector.broadcast %cst_12 : f32 to vector<16x1xf32>
    %15 = arith.addf %13, %14 : vector<16x1xf32>
    %16 = math.rsqrt %15 : vector<16x1xf32>
    %17 = vector.broadcast %16 : vector<16x1xf32> to vector<16x64xf32>
    %18 = arith.mulf %3, %17 : vector<16x64xf32>
    %19 = vector.broadcast %8 : vector<1x64xf32> to vector<16x64xf32>
    %20 = arith.mulf %18, %19 : vector<16x64xf32>
    %21 = arith.truncf %20 : vector<16x64xf32> to vector<16x64xbf16>
    %c0_13 = arith.constant 0 : index
    %c0_14 = arith.constant 0 : index
    %c0_15 = arith.constant 0 : index
    %22 = vector.load %arg6[%c0_13, %c0_14, %c0_15] : memref<1x64x128xbf16, #tpu.memory_space<vmem>>, vector<1x64x128xbf16>
    %23 = vector.shape_cast %22 : vector<1x64x128xbf16> to vector<64x128xbf16>
    %cst_16 = arith.constant dense<0.000000e+00> : vector<16x128xf32>
    %24 = tpu.matmul %21, %23, %cst_16 {dimension_numbers = #tpu.dot_dimension_numbers<[1], [0], [0], [1], [0, 0, 1, 1], [], []>} : vector<16x64xbf16>, vector<64x128xbf16>, vector<16x128xf32> -> vector<16x128xf32>
    %25 = vector.extract_strided_slice %24 {offsets = [0, 64], sizes = [16, 16], strides = [1, 1]} : vector<16x128xf32> to vector<16x16xf32>
    %26 = vector.extract_strided_slice %24 {offsets = [0, 96], sizes = [16, 16], strides = [1, 1]} : vector<16x128xf32> to vector<16x16xf32>
    %27 = vector.extract_strided_slice %25 {offsets = [0, 0], sizes = [16, 8], strides = [1, 1]} : vector<16x16xf32> to vector<16x8xf32>
    %28 = vector.extract_strided_slice %25 {offsets = [0, 8], sizes = [16, 8], strides = [1, 1]} : vector<16x16xf32> to vector<16x8xf32>
    %cst_17 = arith.constant 0.000000e+00 : f32
    %29 = vector.broadcast %cst_17 : f32 to vector<16x8xf32>
    %30 = arith.subf %29, %28 : vector<16x8xf32>
    %31 = tpu.concatenate %30, %27 in 1 : vector<16x8xf32>, vector<16x8xf32> -> vector<16x16xf32>
    %32 = arith.mulf %25, %4 : vector<16x16xf32>
    %33 = arith.mulf %31, %5 : vector<16x16xf32>
    %34 = arith.addf %32, %33 : vector<16x16xf32>
    %35 = vector.extract_strided_slice %24 {offsets = [0, 80], sizes = [16, 16], strides = [1, 1]} : vector<16x128xf32> to vector<16x16xf32>
    %36 = vector.extract_strided_slice %24 {offsets = [0, 112], sizes = [16, 16], strides = [1, 1]} : vector<16x128xf32> to vector<16x16xf32>
    %37 = vector.extract_strided_slice %35 {offsets = [0, 0], sizes = [16, 8], strides = [1, 1]} : vector<16x16xf32> to vector<16x8xf32>
    %38 = vector.extract_strided_slice %35 {offsets = [0, 8], sizes = [16, 8], strides = [1, 1]} : vector<16x16xf32> to vector<16x8xf32>
    %cst_18 = arith.constant 0.000000e+00 : f32
    %39 = vector.broadcast %cst_18 : f32 to vector<16x8xf32>
    %40 = arith.subf %39, %38 : vector<16x8xf32>
    %41 = tpu.concatenate %40, %37 in 1 : vector<16x8xf32>, vector<16x8xf32> -> vector<16x16xf32>
    %42 = arith.mulf %35, %4 : vector<16x16xf32>
    %43 = arith.mulf %41, %5 : vector<16x16xf32>
    %44 = arith.addf %42, %43 : vector<16x16xf32>
    %45 = vector.extract_strided_slice %24 {offsets = [0, 0], sizes = [16, 16], strides = [1, 1]} : vector<16x128xf32> to vector<16x16xf32>
    %46 = vector.extract_strided_slice %45 {offsets = [0, 0], sizes = [16, 8], strides = [1, 1]} : vector<16x16xf32> to vector<16x8xf32>
    %47 = vector.extract_strided_slice %45 {offsets = [0, 8], sizes = [16, 8], strides = [1, 1]} : vector<16x16xf32> to vector<16x8xf32>
    %cst_19 = arith.constant 0.000000e+00 : f32
    %48 = vector.broadcast %cst_19 : f32 to vector<16x8xf32>
    %49 = arith.subf %48, %47 : vector<16x8xf32>
    %50 = tpu.concatenate %49, %46 in 1 : vector<16x8xf32>, vector<16x8xf32> -> vector<16x16xf32>
    %51 = arith.mulf %45, %4 : vector<16x16xf32>
    %52 = arith.mulf %50, %5 : vector<16x16xf32>
    %53 = arith.addf %51, %52 : vector<16x16xf32>
    %cst_20 = arith.constant dense<0.000000e+00> : vector<16x16xf32>
    %54 = tpu.matmul %53, %34, %cst_20 {dimension_numbers = #tpu.dot_dimension_numbers<[1], [1], [0], [0], [0, 0, 1, 0], [], []>} : vector<16x16xf32>, vector<16x16xf32>, vector<16x16xf32> -> vector<16x16xf32>
    %cst_21 = arith.constant 2.500000e-01 : f32
    %55 = vector.broadcast %cst_21 : f32 to vector<16x16xf32>
    %56 = arith.mulf %54, %55 : vector<16x16xf32>
    %57 = arith.addf %56, %6 : vector<16x16xf32>
    %cst_22 = arith.constant dense<0xFF800000> : vector<16xf32>
    %58 = vector.multi_reduction <maximumf>, %57, %cst_22 [1] : vector<16x16xf32> to vector<16xf32>
    %59 = vector.shape_cast %58 : vector<16xf32> to vector<16x1xf32>
    %60 = vector.broadcast %59 : vector<16x1xf32> to vector<16x16xf32>
    %61 = arith.subf %57, %60 : vector<16x16xf32>
    %62 = math.exp %61 : vector<16x16xf32>
    %cst_23 = arith.constant dense<0.000000e+00> : vector<16xf32>
    %63 = vector.multi_reduction <add>, %62, %cst_23 [1] : vector<16x16xf32> to vector<16xf32>
    %64 = vector.shape_cast %63 : vector<16xf32> to vector<16x1xf32>
    %65 = tpu.reciprocal %64 {approx = true} : vector<16x1xf32> -> vector<16x1xf32>
    %66 = vector.broadcast %65 : vector<16x1xf32> to vector<16x16xf32>
    %67 = arith.mulf %62, %66 : vector<16x16xf32>
    %cst_24 = arith.constant dense<0.000000e+00> : vector<16x16xf32>
    %68 = tpu.matmul %67, %26, %cst_24 {dimension_numbers = #tpu.dot_dimension_numbers<[1], [0], [0], [1], [0, 0, 1, 1], [], []>} : vector<16x16xf32>, vector<16x16xf32>, vector<16x16xf32> -> vector<16x16xf32>
    %69 = vector.extract_strided_slice %24 {offsets = [0, 16], sizes = [16, 16], strides = [1, 1]} : vector<16x128xf32> to vector<16x16xf32>
    %70 = vector.extract_strided_slice %69 {offsets = [0, 0], sizes = [16, 8], strides = [1, 1]} : vector<16x16xf32> to vector<16x8xf32>
    %71 = vector.extract_strided_slice %69 {offsets = [0, 8], sizes = [16, 8], strides = [1, 1]} : vector<16x16xf32> to vector<16x8xf32>
    %cst_25 = arith.constant 0.000000e+00 : f32
    %72 = vector.broadcast %cst_25 : f32 to vector<16x8xf32>
    %73 = arith.subf %72, %71 : vector<16x8xf32>
    %74 = tpu.concatenate %73, %70 in 1 : vector<16x8xf32>, vector<16x8xf32> -> vector<16x16xf32>
    %75 = arith.mulf %69, %4 : vector<16x16xf32>
    %76 = arith.mulf %74, %5 : vector<16x16xf32>
    %77 = arith.addf %75, %76 : vector<16x16xf32>
    %cst_26 = arith.constant dense<0.000000e+00> : vector<16x16xf32>
    %78 = tpu.matmul %77, %34, %cst_26 {dimension_numbers = #tpu.dot_dimension_numbers<[1], [1], [0], [0], [0, 0, 1, 0], [], []>} : vector<16x16xf32>, vector<16x16xf32>, vector<16x16xf32> -> vector<16x16xf32>
    %cst_27 = arith.constant 2.500000e-01 : f32
    %79 = vector.broadcast %cst_27 : f32 to vector<16x16xf32>
    %80 = arith.mulf %78, %79 : vector<16x16xf32>
    %81 = arith.addf %80, %6 : vector<16x16xf32>
    %cst_28 = arith.constant dense<0xFF800000> : vector<16xf32>
    %82 = vector.multi_reduction <maximumf>, %81, %cst_28 [1] : vector<16x16xf32> to vector<16xf32>
    %83 = vector.shape_cast %82 : vector<16xf32> to vector<16x1xf32>
    %84 = vector.broadcast %83 : vector<16x1xf32> to vector<16x16xf32>
    %85 = arith.subf %81, %84 : vector<16x16xf32>
    %86 = math.exp %85 : vector<16x16xf32>
    %cst_29 = arith.constant dense<0.000000e+00> : vector<16xf32>
    %87 = vector.multi_reduction <add>, %86, %cst_29 [1] : vector<16x16xf32> to vector<16xf32>
    %88 = vector.shape_cast %87 : vector<16xf32> to vector<16x1xf32>
    %89 = tpu.reciprocal %88 {approx = true} : vector<16x1xf32> -> vector<16x1xf32>
    %90 = vector.broadcast %89 : vector<16x1xf32> to vector<16x16xf32>
    %91 = arith.mulf %86, %90 : vector<16x16xf32>
    %cst_30 = arith.constant dense<0.000000e+00> : vector<16x16xf32>
    %92 = tpu.matmul %91, %26, %cst_30 {dimension_numbers = #tpu.dot_dimension_numbers<[1], [0], [0], [1], [0, 0, 1, 1], [], []>} : vector<16x16xf32>, vector<16x16xf32>, vector<16x16xf32> -> vector<16x16xf32>
    %93 = vector.extract_strided_slice %24 {offsets = [0, 32], sizes = [16, 16], strides = [1, 1]} : vector<16x128xf32> to vector<16x16xf32>
    %94 = vector.extract_strided_slice %93 {offsets = [0, 0], sizes = [16, 8], strides = [1, 1]} : vector<16x16xf32> to vector<16x8xf32>
    %95 = vector.extract_strided_slice %93 {offsets = [0, 8], sizes = [16, 8], strides = [1, 1]} : vector<16x16xf32> to vector<16x8xf32>
    %cst_31 = arith.constant 0.000000e+00 : f32
    %96 = vector.broadcast %cst_31 : f32 to vector<16x8xf32>
    %97 = arith.subf %96, %95 : vector<16x8xf32>
    %98 = tpu.concatenate %97, %94 in 1 : vector<16x8xf32>, vector<16x8xf32> -> vector<16x16xf32>
    %99 = arith.mulf %93, %4 : vector<16x16xf32>
    %100 = arith.mulf %98, %5 : vector<16x16xf32>
    %101 = arith.addf %99, %100 : vector<16x16xf32>
    %cst_32 = arith.constant dense<0.000000e+00> : vector<16x16xf32>
    %102 = tpu.matmul %101, %44, %cst_32 {dimension_numbers = #tpu.dot_dimension_numbers<[1], [1], [0], [0], [0, 0, 1, 0], [], []>} : vector<16x16xf32>, vector<16x16xf32>, vector<16x16xf32> -> vector<16x16xf32>
    %cst_33 = arith.constant 2.500000e-01 : f32
    %103 = vector.broadcast %cst_33 : f32 to vector<16x16xf32>
    %104 = arith.mulf %102, %103 : vector<16x16xf32>
    %105 = arith.addf %104, %6 : vector<16x16xf32>
    %cst_34 = arith.constant dense<0xFF800000> : vector<16xf32>
    %106 = vector.multi_reduction <maximumf>, %105, %cst_34 [1] : vector<16x16xf32> to vector<16xf32>
    %107 = vector.shape_cast %106 : vector<16xf32> to vector<16x1xf32>
    %108 = vector.broadcast %107 : vector<16x1xf32> to vector<16x16xf32>
    %109 = arith.subf %105, %108 : vector<16x16xf32>
    %110 = math.exp %109 : vector<16x16xf32>
    %cst_35 = arith.constant dense<0.000000e+00> : vector<16xf32>
    %111 = vector.multi_reduction <add>, %110, %cst_35 [1] : vector<16x16xf32> to vector<16xf32>
    %112 = vector.shape_cast %111 : vector<16xf32> to vector<16x1xf32>
    %113 = tpu.reciprocal %112 {approx = true} : vector<16x1xf32> -> vector<16x1xf32>
    %114 = vector.broadcast %113 : vector<16x1xf32> to vector<16x16xf32>
    %115 = arith.mulf %110, %114 : vector<16x16xf32>
    %cst_36 = arith.constant dense<0.000000e+00> : vector<16x16xf32>
    %116 = tpu.matmul %115, %36, %cst_36 {dimension_numbers = #tpu.dot_dimension_numbers<[1], [0], [0], [1], [0, 0, 1, 1], [], []>} : vector<16x16xf32>, vector<16x16xf32>, vector<16x16xf32> -> vector<16x16xf32>
    %117 = vector.extract_strided_slice %24 {offsets = [0, 48], sizes = [16, 16], strides = [1, 1]} : vector<16x128xf32> to vector<16x16xf32>
    %118 = vector.extract_strided_slice %117 {offsets = [0, 0], sizes = [16, 8], strides = [1, 1]} : vector<16x16xf32> to vector<16x8xf32>
    %119 = vector.extract_strided_slice %117 {offsets = [0, 8], sizes = [16, 8], strides = [1, 1]} : vector<16x16xf32> to vector<16x8xf32>
    %cst_37 = arith.constant 0.000000e+00 : f32
    %120 = vector.broadcast %cst_37 : f32 to vector<16x8xf32>
    %121 = arith.subf %120, %119 : vector<16x8xf32>
    %122 = tpu.concatenate %121, %118 in 1 : vector<16x8xf32>, vector<16x8xf32> -> vector<16x16xf32>
    %123 = arith.mulf %117, %4 : vector<16x16xf32>
    %124 = arith.mulf %122, %5 : vector<16x16xf32>
    %125 = arith.addf %123, %124 : vector<16x16xf32>
    %cst_38 = arith.constant dense<0.000000e+00> : vector<16x16xf32>
    %126 = tpu.matmul %125, %44, %cst_38 {dimension_numbers = #tpu.dot_dimension_numbers<[1], [1], [0], [0], [0, 0, 1, 0], [], []>} : vector<16x16xf32>, vector<16x16xf32>, vector<16x16xf32> -> vector<16x16xf32>
    %cst_39 = arith.constant 2.500000e-01 : f32
    %127 = vector.broadcast %cst_39 : f32 to vector<16x16xf32>
    %128 = arith.mulf %126, %127 : vector<16x16xf32>
    %129 = arith.addf %128, %6 : vector<16x16xf32>
    %cst_40 = arith.constant dense<0xFF800000> : vector<16xf32>
    %130 = vector.multi_reduction <maximumf>, %129, %cst_40 [1] : vector<16x16xf32> to vector<16xf32>
    %131 = vector.shape_cast %130 : vector<16xf32> to vector<16x1xf32>
    %132 = vector.broadcast %131 : vector<16x1xf32> to vector<16x16xf32>
    %133 = arith.subf %129, %132 : vector<16x16xf32>
    %134 = math.exp %133 : vector<16x16xf32>
    %cst_41 = arith.constant dense<0.000000e+00> : vector<16xf32>
    %135 = vector.multi_reduction <add>, %134, %cst_41 [1] : vector<16x16xf32> to vector<16xf32>
    %136 = vector.shape_cast %135 : vector<16xf32> to vector<16x1xf32>
    %137 = tpu.reciprocal %136 {approx = true} : vector<16x1xf32> -> vector<16x1xf32>
    %138 = vector.broadcast %137 : vector<16x1xf32> to vector<16x16xf32>
    %139 = arith.mulf %134, %138 : vector<16x16xf32>
    %cst_42 = arith.constant dense<0.000000e+00> : vector<16x16xf32>
    %140 = tpu.matmul %139, %36, %cst_42 {dimension_numbers = #tpu.dot_dimension_numbers<[1], [0], [0], [1], [0, 0, 1, 1], [], []>} : vector<16x16xf32>, vector<16x16xf32>, vector<16x16xf32> -> vector<16x16xf32>
    %141 = tpu.concatenate %68, %92, %116, %140 in 1 : vector<16x16xf32>, vector<16x16xf32>, vector<16x16xf32>, vector<16x16xf32> -> vector<16x64xf32>
    %142 = arith.truncf %141 : vector<16x64xf32> to vector<16x64xbf16>
    %c0_43 = arith.constant 0 : index
    %c0_44 = arith.constant 0 : index
    %c0_45 = arith.constant 0 : index
    %143 = vector.load %arg7[%c0_43, %c0_44, %c0_45] : memref<1x64x64xbf16, #tpu.memory_space<vmem>>, vector<1x64x64xbf16>
    %144 = vector.shape_cast %143 : vector<1x64x64xbf16> to vector<64x64xbf16>
    %cst_46 = arith.constant dense<0.000000e+00> : vector<16x64xf32>
    %145 = tpu.matmul %142, %144, %cst_46 {dimension_numbers = #tpu.dot_dimension_numbers<[1], [0], [0], [1], [0, 0, 1, 1], [], []>} : vector<16x64xbf16>, vector<64x64xbf16>, vector<16x64xf32> -> vector<16x64xf32>
    %146 = arith.addf %3, %145 : vector<16x64xf32>
    %c0_47 = arith.constant 0 : index
    %c0_48 = arith.constant 0 : index
    %c0_49 = arith.constant 0 : index
    %147 = vector.load %arg8[%c0_47, %c0_48, %c0_49] : memref<1x1x64xf32, #tpu.memory_space<vmem>>, vector<1x1x64xf32>
    %148 = vector.shape_cast %147 : vector<1x1x64xf32> to vector<1x64xf32>
    %149 = arith.mulf %146, %146 : vector<16x64xf32>
    %cst_50 = arith.constant dense<0.000000e+00> : vector<16xf32>
    %150 = vector.multi_reduction <add>, %149, %cst_50 [1] : vector<16x64xf32> to vector<16xf32>
    %151 = vector.shape_cast %150 : vector<16xf32> to vector<16x1xf32>
    %cst_51 = arith.constant 6.400000e+01 : f32
    %152 = vector.broadcast %cst_51 : f32 to vector<16x1xf32>
    %153 = arith.divf %151, %152 : vector<16x1xf32>
    %cst_52 = arith.constant 9.99999974E-6 : f32
    %154 = vector.broadcast %cst_52 : f32 to vector<16x1xf32>
    %155 = arith.addf %153, %154 : vector<16x1xf32>
    %156 = math.rsqrt %155 : vector<16x1xf32>
    %157 = vector.broadcast %156 : vector<16x1xf32> to vector<16x64xf32>
    %158 = arith.mulf %146, %157 : vector<16x64xf32>
    %159 = vector.broadcast %148 : vector<1x64xf32> to vector<16x64xf32>
    %160 = arith.mulf %158, %159 : vector<16x64xf32>
    %161 = arith.truncf %160 : vector<16x64xf32> to vector<16x64xbf16>
    %c0_53 = arith.constant 0 : index
    %c0_54 = arith.constant 0 : index
    %c0_55 = arith.constant 0 : index
    %162 = vector.load %arg9[%c0_53, %c0_54, %c0_55] : memref<1x64x256xbf16, #tpu.memory_space<vmem>>, vector<1x64x256xbf16>
    %163 = vector.shape_cast %162 : vector<1x64x256xbf16> to vector<64x256xbf16>
    %cst_56 = arith.constant dense<0.000000e+00> : vector<16x256xf32>
    %164 = tpu.matmul %161, %163, %cst_56 {dimension_numbers = #tpu.dot_dimension_numbers<[1], [0], [0], [1], [0, 0, 1, 1], [], []>} : vector<16x64xbf16>, vector<64x256xbf16>, vector<16x256xf32> -> vector<16x256xf32>
    %165 = vector.extract_strided_slice %164 {offsets = [0, 0], sizes = [16, 128], strides = [1, 1]} : vector<16x256xf32> to vector<16x128xf32>
    %166 = vector.extract_strided_slice %164 {offsets = [0, 128], sizes = [16, 128], strides = [1, 1]} : vector<16x256xf32> to vector<16x128xf32>
    %167 = arith.negf %165 : vector<16x128xf32>
    %168 = math.exp %167 : vector<16x128xf32>
    %cst_57 = arith.constant 1.000000e+00 : f32
    %169 = vector.broadcast %cst_57 : f32 to vector<16x128xf32>
    %170 = arith.addf %169, %168 : vector<16x128xf32>
    %171 = arith.divf %169, %170 : vector<16x128xf32>
    %172 = arith.mulf %165, %171 : vector<16x128xf32>
    %173 = arith.mulf %172, %166 : vector<16x128xf32>
    %174 = arith.truncf %173 : vector<16x128xf32> to vector<16x128xbf16>
    %c0_58 = arith.constant 0 : index
    %c0_59 = arith.constant 0 : index
    %c0_60 = arith.constant 0 : index
    %175 = vector.load %arg10[%c0_58, %c0_59, %c0_60] : memref<1x128x64xbf16, #tpu.memory_space<vmem>>, vector<1x128x64xbf16>
    %176 = vector.shape_cast %175 : vector<1x128x64xbf16> to vector<128x64xbf16>
    %cst_61 = arith.constant dense<0.000000e+00> : vector<16x64xf32>
    %177 = tpu.matmul %174, %176, %cst_61 {dimension_numbers = #tpu.dot_dimension_numbers<[1], [0], [0], [1], [0, 0, 1, 1], [], []>} : vector<16x128xbf16>, vector<128x64xbf16>, vector<16x64xf32> -> vector<16x64xf32>
    %178 = arith.addf %146, %177 : vector<16x64xf32>
    %c0_62 = arith.constant 0 : index
    %c0_63 = arith.constant 0 : index
    %179 = vector.load %arg12[%c0_62, %c0_63] : memref<16x64xf32, #tpu.memory_space<vmem>>, vector<16x64xf32>
    tpu.vector_store %arg12[%c0_62, %c0_63], %178 {strides = array<i32>} : memref<16x64xf32, #tpu.memory_space<vmem>>, vector<16x64xf32>,
    %c0_64 = arith.constant 0 : index
    %c0_65 = arith.constant 0 : index
    %180 = vector.load %arg11[%c0_64, %c0_65] : memref<16x64xf32, #tpu.memory_space<vmem>>, vector<16x64xf32>
    tpu.vector_store %arg11[%c0_64, %c0_65], %178 {strides = array<i32>} : memref<16x64xf32, #tpu.memory_space<vmem>>, vector<16x64xf32>,
    return
  }
  func.func @transform_0(%arg0: i32) -> (i32, i32) {
    %c0_i32 = arith.constant 0 : i32
    %c0_i32_0 = arith.constant 0 : i32
    %c0_i32_1 = arith.constant 0 : i32
    return %c0_i32, %c0_i32_0 : i32, i32
  }
  func.func @transform_1(%arg0: i32) -> (i32, i32) {
    %c0_i32 = arith.constant 0 : i32
    %c0_i32_0 = arith.constant 0 : i32
    %c0_i32_1 = arith.constant 0 : i32
    return %c0_i32, %c0_i32_0 : i32, i32
  }
  func.func @transform_2(%arg0: i32) -> (i32, i32) {
    %c0_i32 = arith.constant 0 : i32
    %c0_i32_0 = arith.constant 0 : i32
    %c0_i32_1 = arith.constant 0 : i32
    return %c0_i32, %c0_i32_0 : i32, i32
  }
  func.func @transform_3(%arg0: i32) -> (i32, i32) {
    %c0_i32 = arith.constant 0 : i32
    %c0_i32_0 = arith.constant 0 : i32
    %c0_i32_1 = arith.constant 0 : i32
    return %c0_i32, %c0_i32_0 : i32, i32
  }
  func.func @transform_4(%arg0: i32) -> (i32, i32, i32) {
    %c0_i32 = arith.constant 0 : i32
    %c0_i32_0 = arith.constant 0 : i32
    %c0_i32_1 = arith.constant 0 : i32
    return %arg0, %c0_i32, %c0_i32_0 : i32, i32, i32
  }
  func.func @transform_5(%arg0: i32) -> (i32, i32, i32) {
    %c0_i32 = arith.constant 0 : i32
    %c0_i32_0 = arith.constant 0 : i32
    %c0_i32_1 = arith.constant 0 : i32
    return %arg0, %c0_i32, %c0_i32_0 : i32, i32, i32
  }
  func.func @transform_6(%arg0: i32) -> (i32, i32, i32) {
    %c0_i32 = arith.constant 0 : i32
    %c0_i32_0 = arith.constant 0 : i32
    %c0_i32_1 = arith.constant 0 : i32
    return %arg0, %c0_i32, %c0_i32_0 : i32, i32, i32
  }
  func.func @transform_7(%arg0: i32) -> (i32, i32, i32) {
    %c0_i32 = arith.constant 0 : i32
    %c0_i32_0 = arith.constant 0 : i32
    %c0_i32_1 = arith.constant 0 : i32
    return %arg0, %c0_i32, %c0_i32_0 : i32, i32, i32
  }
  func.func @transform_8(%arg0: i32) -> (i32, i32, i32) {
    %c0_i32 = arith.constant 0 : i32
    %c0_i32_0 = arith.constant 0 : i32
    %c0_i32_1 = arith.constant 0 : i32
    return %arg0, %c0_i32, %c0_i32_0 : i32, i32, i32
  }
  func.func @transform_9(%arg0: i32) -> (i32, i32, i32) {
    %c0_i32 = arith.constant 0 : i32
    %c0_i32_0 = arith.constant 0 : i32
    %c0_i32_1 = arith.constant 0 : i32
    return %arg0, %c0_i32, %c0_i32_0 : i32, i32, i32
  }
  func.func @transform_10(%arg0: i32) -> (i32, i32) {
    %c0_i32 = arith.constant 0 : i32
    %c0_i32_0 = arith.constant 0 : i32
    %c0_i32_1 = arith.constant 0 : i32
    return %c0_i32, %c0_i32_0 : i32, i32
  }
}

</mosaic_0001>

<bundles_post_ra>
// kernel: llama_head_a.1
= control target key start
LH: loop header
LB: loop body
LE: loop exit
PB: predicated region body
PF: predicated region fallthrough
CT: control target
= control target key end

     0   :  { %s3170_s0 = inlined_call_operand.vmem [shape: f32[16,64], index: 0, kind: input, shape index: {}]   ;;  %s3171_s1 = inlined_call_operand.vmem [shape: f32[16,16], index: 1, kind: input, shape index: {}]   ;;  %s3172_s2 = inlined_call_operand.vmem [shape: f32[16,16], index: 2, kind: input, shape index: {}]   ;;  %s3173_s3 = inlined_call_operand.vmem [shape: f32[16,16], index: 3, kind: input, shape index: {}]   ;;  %s3174_s4 = inlined_call_operand.vmem [shape: f32[24,1,64], index: 4, kind: input, shape index: {}]   ;;  %s3175_s5 = inlined_call_operand.vmem [shape: bf16[24,64,128], index: 5, kind: input, shape index: {}]   ;;  %s3176_s6 = inlined_call_operand.hbm [shape: bf16[24,64,64], index: 6, kind: input, shape index: {}]   ;;  %s3177_s7 = inlined_call_operand.vmem [shape: f32[24,1,64], index: 7, kind: input, shape index: {}]   ;;  %s3178_s8 = inlined_call_operand.vmem [shape: bf16[24,64,256], index: 8, kind: input, shape index: {}]   ;;  %s3179_s9 = inlined_call_operand.vmem [shape: bf16[24,128,64], index: 9, kind: input, shape index: {}]   ;;  %s3180_s10 = inlined_call_operand.hbm [shape: f32[16,64], index: 10, kind: output, shape index: {}]  }
   0x1   :  { %3181 = sst [smem:[#allocation9_spill]] %s3176_s6 }
   0x2   :  { %15 = vsyncpa [#allocation4], 0 }
   0x3   :  { %17 = vsyncpa [#allocation4 + $0x1], 0 }
   0x4   :  { %18 = vsyncpa [#allocation5], 0  ;;  %s2663_s13 = smov 0   ;;  %s2665_s14 = smov 0  }
   0x5   :  { %s2667_s15 = smov 0   ;;  %s2669_s16 = smov 0  }
   0x6 LB: > { %s2682_s17 = sadd.s32 4294967295, %s2584_s16   ;;  %s2685_s18 = sadd.s32 1, %s2584_s16   ;;  %s2584_s16 = sphi %s2669_s16, %s3192_s16   ;;  %s2580_s15 = sphi %s2667_s15, %s3191_s15   ;;  %s2576_s14 = sphi %s2665_s14, %s3190_s14   ;;  %s2572_s13 = sphi %s2663_s13, %s3189_s13  }
   0x7   : > { %s164_s19 = ssub.s32 %s2584_s16, %s2685_s18  ;;  %s167_s20 = sadd.s32 1, %s2580_s15 }
   0x8   : > { %p165_p0 = scmp.eq.s32.totalorder %s164_s19, 0  ;;  %p174_p1 = scmp.ne.s32.totalorder %s2580_s15, %s2576_s14 }
   0x9   : > { %p175_p2 = scmp.eq.s32.totalorder %s2584_s16, 0  ;;  %p180_p3 = scmp.ne.s32.totalorder %s2576_s14, %s2572_s13 }
   0xa   : > { %s2695_s21 = scalar_select %p165_p0, %s2580_s15, %s167_s20  }
   0xb   : > { %p176_p4 = por %p175_p2, %p174_p1  ;;  %p181_p5 = scmp.eq.s32.totalorder %s2682_s17, 0 }
   0xc   : > { %p2323_p6 = scmp.lt.s32.totalorder %s2584_s16, 24  ;;  %s329_s23 = sand.u32 1, %s2580_s15  }
   0xd   : > { %p2699_p7 = por %p181_p5, %p180_p3  ;;  %s2047_s24 = sshll.u32 %s329_s23, 5 }
   0xe   : > { %s2118_s25 = sshll.u32 %s2584_s16, 9  ;;  %s3183_s6 = sld [smem:[#allocation9_spill]] }
   0xf   : > { %s333_s29 = scalar_lea.vmem [#allocation3], %s2047_s24  ;;  %p2712_p8 = pnand %p2323_p6, %p176_p4 }
  0x10   : > { %s340_s30 = sshll.u32 %s333_s29, 4  ;;  %s2717_s12 = scalar_lea.sflag [#allocation4], %s329_s23  ;;  %s2710_s30 = int_to_ptr.vmem [resolvable:$true] %s340_s30 }
  0x11   : > { %p2492_p11 = pneg %p2712_p8 }
  0x14   : > { %s2708_s28 = scalar_lea.hbm %s3183_s6, %s2118_s25  ;;  %s2495_s24 = scalar_lea.hbm %s3183_s6, 12288 }
  0x15   : > { %s2490_s13 = scalar_lea.hbm %s2708_s28, 512  ;;  %p2496_p0 = scmp.lt.u32.totalorder %s2708_s28, %s3183_s6 }
  0x16   : > { %p2491_p10 = scmp.ne.s32.totalorder %s2708_s28, %s2490_s13  ;;  %p2497_p1 = scmp.lt.u32.totalorder %s2495_s24, %s2490_s13 }
  0x17   : > { %p2499_p3 = scmp.lt.u32.totalorder %s2490_s13, %s2708_s28 }
  0x18   : > { %p2493_p12 = pnand %p2492_p11, %p2491_p10  ;;  %p2498_p2 = por %p2497_p1, %p2496_p0 }
  0x1a   : > { %p2494_p13 = pneg %p2493_p12  ;;  %p2500_p4 = por %p2499_p3, %p2498_p2 }
  0x1c   : > { %p2501_p5 = pnand %p2500_p4, %p2494_p13 }
  0x1e   : > { %2504 = shalt.err (!%p2501_p5)
}
  0x1f   : > { %s2505_s23 = scalar_lea.vmem %s2710_s30, 512  ;;  %s2586_s27 = smov [#allocation3]  }
  0x20   : > { %p2506_p6 = scmp.ne.s32.totalorder %s2710_s30, %s2505_s23  ;;  %s2510_s29 = sshll.u32 %s2586_s27, 4  ;;  %s2511_s29 = int_to_ptr.vmem [resolvable:$false] %s2510_s29 }
  0x21   : > { %s2512_s19 = scalar_lea.vmem %s2511_s29, 1024  ;;  %p2513_p9 = scmp.lt.s32.totalorder %s2710_s30, %s2511_s29 }
  0x22   : > { %p2508_p10 = pnand %p2506_p6, %p2492_p11  ;;  %p2514_p0 = scmp.lt.s32.totalorder %s2512_s19, %s2505_s23 }
  0x24   : > { %p2509_p12 = pneg %p2508_p10  ;;  %p2515_p1 = por %p2514_p0, %p2513_p9 }
  0x26   : > { %p2516_p2 = pnand %p2515_p1, %p2509_p12 }
  0x28   : > { %2519 = shalt.err (!%p2516_p2)
}
  0x29   : > { %s2587_s13 = smov 64   ;;  %s2588_s20 = smov 4  }
  0x2a   : > { %2322 = dma.hbm_to_vmem [thread:$0]  (!%p2712_p8), %s2708_s28, 512, %s2710_s30, %s2717_s12, %s2587_s13, %s2587_s13, %s2588_s20  }
  0x2b   : > { %p370_p11 = scmp.lt.s32.totalorder %s2584_s16, 25  ;;  %p3185_p13 = scmp.ge.s32.totalorder %s2584_s16, 1 }
  0x2d   : > { %p371_p3 = pnand %p3185_p13, %p370_p11 }
  0x2e   : > { %s376_s24 = sand.u32 (!%p371_p3), 1, %s2576_s14  }
  0x2f   : > { %374 = sbr.rel (%p371_p3) target bundleno = 3751 (0xea7), region = 60  ;;  %s2051_s25 = sshll.u32 (!%p371_p3), %s376_s24, 5 }
  0x30   : > { %s377_s26 = scalar_lea.sflag (!%p371_p3), [#allocation4], %s376_s24  ;;  %s2749_s23 = scalar_lea.vmem (!%p371_p3), [#allocation3], %s2051_s25 }
  0x36   : > { %2563 = dma.done.wait (%p2699_p7), %s377_s26, 512  }
  0x37   : > { %2565 = vsyncadd (%p2699_p7), %s377_s26, 4294966784  ;;  %p433_p9 = scmp.lt.s32.totalorder %s2682_s17, 23  ;;  %p2058_p7 = scmp.ne.s32.totalorder %s2682_s17, 0 }
  0x38   : > { %v459_v0 = vld [vmem:[%s3170_s0] sm:$0xff] (!%p2058_p7)  ;;  %vm461_vm0 = vcmask (!%p2058_p7), 523264   ;;  %v460_v1 = vld [vmem:[%s3170_s0 + $0x8] sm:$0xff] (!%p2058_p7) }
  0x39   : > { %s2757_s28 = scalar_select %p433_p9, %s2682_s17, 23 }
  0x3a   : > { %458 = sbr.rel (%p2058_p7) target bundleno = 65 (0x41), region = 68  ;;  %462 = vst.msk [vmem:[#allocation2] sm:$0xff] (!%p2058_p7), %vm461_vm0, %v459_v0  ;;  %463 = vst.msk [vmem:[#allocation2 + $0x8] sm:$0xff] (!%p2058_p7), %vm461_vm0, %v460_v1 }
  0x3b   : > { %s2119_s12 = sshll.u32 %s2757_s28, 5  ;;  %s443_s20 = scalar_lea.vmem %s3177_s7, %s2757_s28 }
  0x3c   : > { %s2767_s19 = scalar_lea.vmem %s3175_s5, %s2119_s12  ;;  %s2120_s24 = sshll.u32 %s2757_s28, 6 }
  0x3d   : > { %s2777_s6 = scalar_lea.vmem %s3178_s8, %s2120_s24  ;;  %s2782_s11 = scalar_lea.vmem %s3179_s9, %s2120_s24 }
  0x41 PF: > { %v2791_v2 = vld [vmem:[#allocation2] sm:$0xff]  ;;  %vm475_vm1 = vcmask 523264   ;;  %v2793_v3 = vld [vmem:[#allocation2 + $0x8] sm:$0xff]  ;;  %v2589_v9 = vmov 0.0   ;;  %vm2590_vm2 = vmmov 0   ;;  %v2416_v11 = vld [vmem:[%s2767_s19 + $0x10] sm:$0xff]   ;;  %s3186_s25 = scalar_lea.vmem %s3174_s4, %s2757_s28 }
  0x42   : > { %v473_v4 = vmul.f32 %v2791_v2, %v2791_v2  ;;  %v474_v5 = vmul.f32 %v2793_v3, %v2793_v3  ;;  %v2414_v8 = vld [vmem:[%s2767_s19] sm:$0xff]   ;;  %2173 = vmatprep.subr.bf16.mxu0 %v2589_v9  ;;  %2181 = vmatprep.mubr.msk.bf16.mxu0 %vm2590_vm2, %v2589_v9  ;;  %v2415_v10 = vld [vmem:[%s2767_s19 + $0x8] sm:$0xff]   ;;  %v2417_v12 = vld [vmem:[%s2767_s19 + $0x18] sm:$0xff]   ;;  %s2591_s19 = smov 72   ;;  %s2592_s26 = smov 56   ;;  %vm594_vm3 = vcmask 64512  }
  0x43   : > { %2174 = vmatpush3.bf16.msra.mxu0 %v2414_v8  ;;  %v2059_v22 = vld [vmem:[%s3186_s25] ss:$0 sm:$0xff]  ;;  %s2593_s16 = smov 120   ;;  %s2594_s30 = smov 104   ;;  %v2856_v35 = vld [vmem:[%s3171_s1 + $0x8] sm:$0xff]  ;;  %vm679_vm4 = vcmask 130048  }
  0x44   : > { %v476_v6 = vsel %vm475_vm1, %v473_v4, 0.0  ;;  %v479_v7 = vsel %vm475_vm1, %v474_v5, 0.0  ;;  %2175 = vmatprep.subr.bf16.mxu0 %v2589_v9  ;;  %v2848_v34 = vld [vmem:[%s3171_s1] sm:$0xff]  ;;  %s2595_s29 = smov 64   ;;  %s2596_s24 = smov 88   ;;  %v2878_v42 = vld [vmem:[%s3172_s2 + $0x8] sm:$0xff]  ;;  %vm2900_vm5 = vmpackc.low %vm679_vm4, %vm679_vm4 }
  0x45   : > { %477 = vadd.xlane.f32.xlu0 %v476_v6  ;;  %v2870_v36 = vld [vmem:[%s3172_s2] sm:$0xff]  ;;  %s2597_s22 = smov 8   ;;  %s2598_s13 = smov 40   ;;  %vm1598_vm6 = vcmask 261120   ;;  %vm1601_vm7 = vcmask 392192  }
  0x46   : > { %s2600_s27 = smov 16   ;;  %s2606_s28 = smov [#allocation6]  }
  0x47   : > { %2176 = vmatpush3.bf16.msra.mxu0 %v2415_v10  ;;  %p2324_p8 = scmp.eq.s32.totalorder %s2682_s17, 23 }
  0x48   : > { %2177 = vmatprep.subr.bf16.mxu0 %v2589_v9 }
  0x49   : > { %480 = vadd.xlane.f32.xlu0 %v479_v7 }
  0x4b   : > { %2178 = vmatpush3.bf16.msra.mxu0 %v2416_v11 }
  0x4c   : > { %2179 = vmatprep.subr.bf16.mxu0 %v2589_v9 }
  0x4f   : > { %2180 = vmatpush3.bf16.msra.mxu0 %v2417_v12  ;;  %v2925_v12 = vld [vmem:[%s3173_s3 + $0x8] sm:$0xff] }
  0xd2   : > { %v478_v13 = vpop.xlane.xlu0 %477 }
  0xd3   : > { %v483_v14 = vmul.f32 0.015625, %v478_v13 }
  0xd5   : > { %v485_v15 = vadd.f32 1e-05, %v483_v14 }
  0xd6   : > { %v481_v16 = vpop.xlane.xlu0 %480 }
  0xd7   : > { %2442 = vrsqrt.f32 %v485_v15  ;;  %v484_v17 = vmul.f32 0.015625, %v481_v16  ;;  %v2930_v15 = vld [vmem:[%s3173_s3] sm:$0xff] }
  0xd9   : > { %v486_v18 = vadd.f32 1e-05, %v484_v17 }
  0xdb   : > { %2444 = vrsqrt.f32 %v486_v18 }
  0xe1   : > { %v2443_v19 = vpop.eup %2442 }
  0xe2   : > { %v489_v20 = vmul.f32 %v2443_v19, %v2791_v2 }
  0xe4   : > { %v497_v24 = vmul.f32 %v2059_v22, %v489_v20 }
  0xe5   : > { %v2445_v21 = vpop.eup %2444 }
  0xe6   : > { %v490_v23 = vmul.f32 %v2445_v21, %v2793_v3 }
  0xe8   : > { %v498_v25 = vmul.f32 %v2059_v22, %v490_v23 }
  0xea   : > { %v499_v26 = vpack.c.bf16 %v498_v25, %v497_v24 }
  0xec   : > { %2182 = vmatmul.mubr.msk.bf16.vlgmr.msra.gmra.mrb[0].mxu0 %vm475_vm1, %v499_v26 }
 0x1bf   : > { %v2819_v27 = vpop.f32.mrb[0].mxu0 }
 0x1c0   : > { %588 = vrot.lane.b32.xlu0 %v2819_v27, %s2591_s19  ;;  %v2183_v28 = vpop.f32.mrb[1].mxu0  ;;  %v2824_v29 = vsub.f32 0.0, %v2819_v27  ;;  %v667_v0 = vmul.f32 %v2819_v27, %v2848_v34 }
 0x1c1   : > { %v2826_v30 = vpop.f32.mrb[2].mxu0 }
 0x1c2   : > { %580 = vrot.lane.b32.xlu1 %v2824_v29, %s2592_s26  ;;  %v2184_v31 = vpop.f32.mrb[3].mxu0  ;;  %v2832_v32 = vpack.i.bf16 %v2826_v30, %v2819_v27  ;;  %v2836_v33 = vsub.f32 0.0, %v2826_v30  ;;  %v668_v7 = vmul.f32 %v2826_v30, %v2856_v35 }
 0x1c4   : > { %653 = vrot.lane.b32.xlu0 %v2824_v29, %s2593_s16 }
 0x1c6   : > { %582 = vrot.lane.b32.xlu1 %v2836_v33, %s2592_s26 }
 0x1c8   : > { %655 = vrot.lane.b32.xlu0 %v2836_v33, %s2593_s16 }
 0x1ca   : > { %590 = vrot.lane.b32.xlu1 %v2826_v30, %s2591_s19 }
 0x1cc   : > { %878 = vrot.lane.b32.xlu0 %v2824_v29, %s2594_s30 }
 0x1ce   : > { %599 = vrot.lane.b32.xlu1 %v2848_v34, %s2595_s29 }
 0x1d0   : > { %884 = vrot.lane.b32.xlu0 %v2819_v27, %s2593_s16 }
 0x1d2   : > { %601 = vrot.lane.b32.xlu1 %v2856_v35, %s2595_s29 }
 0x1d4   : > { %886 = vrot.lane.b32.xlu0 %v2826_v30, %s2593_s16  ;;  %s2599_s16 = smov 80  }
 0x1d8   : > { %1104 = vrot.lane.b32.xlu0 %v2824_v29, %s2596_s24 }
 0x1dc   : > { %1110 = vrot.lane.b32.xlu0 %v2819_v27, %s2594_s30 }
 0x1e0   : > { %1106 = vrot.lane.b32.xlu0 %v2836_v33, %s2596_s24 }
 0x232   : > { %v589_v37 = vpop.permute.xlu0 %588 }
 0x234   : > { %v581_v38 = vpop.permute.xlu1 %580 }
 0x235   : > { %v595_v39 = vsel %vm594_vm3, %v581_v38, %v589_v37 }
 0x236   : > { %v607_v40 = vmul.f32 %v595_v39, %v2870_v36  ;;  %v654_v58 = vpop.permute.xlu0 %653 }
 0x238   : > { %611 = vrot.lane.b32.xlu1 %v607_v40, %s2595_s29  ;;  %v583_v41 = vpop.permute.xlu1 %582 }
 0x23a   : > { %v656_v1 = vpop.permute.xlu0 %655 }
 0x23c   : > { %v591_v43 = vpop.permute.xlu1 %590 }
 0x23d   : > { %v596_v44 = vsel %vm594_vm3, %v583_v41, %v591_v43 }
 0x23e   : > { %v608_v45 = vmul.f32 %v596_v44, %v2878_v42  ;;  %v879_v23 = vpop.permute.xlu0 %878 }
 0x240   : > { %613 = vrot.lane.b32.xlu1 %v608_v45, %s2595_s29  ;;  %v600_v46 = vpop.permute.xlu1 %599 }
 0x241   : > { %v605_v49 = vmul.f32 %v600_v46, %v2819_v27 }
 0x242   : > { %v885_v25 = vpop.permute.xlu0 %884 }
 0x243   : > { %v890_v44 = vsel %vm594_vm3, %v879_v23, %v885_v25 }
 0x244   : > { %v602_v47 = vpop.permute.xlu1 %601  ;;  %v900_v46 = vmul.f32 %v890_v44, %v2870_v36 }
 0x245   : > { %v606_v50 = vmul.f32 %v602_v47, %v2826_v30 }
 0x246   : > { %v887_v28 = vpop.permute.xlu0 %886 }
 0x24a   : > { %v1105_v41 = vpop.permute.xlu0 %1104 }
 0x24e   : > { %v1111_v47 = vpop.permute.xlu0 %1110 }
 0x2aa   : > { %v612_v48 = vpop.permute.xlu1 %611 }
 0x2ab   : > { %v617_v52 = vadd.f32 %v612_v48, %v605_v49  ;;  %v1116_v48 = vsel %vm594_vm3, %v1105_v41, %v1111_v47 }
 0x2ac   : > { %v1126_v49 = vmul.f32 %v1116_v48, %v2870_v36 }
 0x2b2   : > { %v614_v51 = vpop.permute.xlu1 %613 }
 0x2b3   : > { %v618_v53 = vadd.f32 %v614_v51, %v606_v50  ;;  %v1107_v50 = vpop.permute.xlu0 %1106 }
 0x2b5   : > { %v2379_v54 = vpack.i.bf16 %v618_v53, %v617_v52 }
 0x2b7   : > { %2380 = vrot.lane.b32.xlu1 %v2379_v54, %s2595_s29  ;;  %s2604_s29 = smov 112  }
 0x2bb   : > { %659 = vrot.lane.b32.xlu1 %v2819_v27, %s2597_s22 }
 0x2bf   : > { %661 = vrot.lane.b32.xlu1 %v2826_v30, %s2597_s22 }
 0x2c3   : > { %619 = vrot.lane.b32.xlu1 %v2824_v29, %s2598_s13 }
 0x2c7   : > { %621 = vrot.lane.b32.xlu1 %v2836_v33, %s2598_s13  ;;  %s2602_s13 = smov 48  }
 0x2cb   : > { %625 = vrot.lane.b32.xlu1 %v2819_v27, %s2592_s26 }
 0x2cf   : > { %627 = vrot.lane.b32.xlu1 %v2826_v30, %s2592_s26  ;;  %s2603_s26 = smov 96  }
 0x2d3   : > { %880 = vrot.lane.b32.xlu1 %v2836_v33, %s2594_s30 }
 0x329   : > { %v2381_v55 = vpop.permute.xlu1 %2380 }
 0x32a   : > { %v2383_v56 = vunpack.i.h.bf16 %v2381_v55  ;;  %v2382_v57 = vunpack.i.l.bf16 %v2381_v55 }
 0x32c   : > { %v2904_v60 = vpack.c.bf16 %v2383_v56, %v2382_v57 }
 0x32d   : > { %v660_v61 = vpop.permute.xlu1 %659 }
 0x32e   : > { %v665_v62 = vsel %vm594_vm3, %v654_v58, %v660_v61  ;;  %2275 = vmatprep.subr.msk.bf16.mxu1 %vm2900_vm5, %v2904_v60 }
 0x32f   : > { %v669_v63 = vmul.f32 %v665_v62, %v2870_v36  ;;  %2278 = vmatpush3.bf16.xpose.msk.msra.mxu1 %vm2900_vm5, %v2904_v60 }
 0x331   : > { %v662_v4 = vpop.permute.xlu1 %661  ;;  %v671_v5 = vadd.f32 %v669_v63, %v667_v0 }
 0x332   : > { %v666_v6 = vsel %vm594_vm3, %v656_v1, %v662_v4 }
 0x333   : > { %v670_v8 = vmul.f32 %v666_v6, %v2878_v42  ;;  %2189 = vmatprep.mubr.msk.f32.mxu1 %vm679_vm4, %v671_v5 }
 0x335   : > { %v672_v10 = vadd.f32 %v670_v8, %v668_v7  ;;  %v620_v21 = vpop.permute.xlu1 %619 }
 0x337   : > { %2190 = vmatmul.mubr.msk.f32.vlgmr.msra.gmra.mrb[0].mxu1 %vm679_vm4, %v672_v10 }
 0x339   : > { %v622_v22 = vpop.permute.xlu1 %621 }
 0x33d   : > { %v626_v24 = vpop.permute.xlu1 %625 }
 0x33e   : > { %v631_v38 = vsel %vm594_vm3, %v620_v21, %v626_v24 }
 0x33f   : > { %v641_v43 = vmul.f32 %v631_v38, %v2870_v36 }
 0x341   : > { %v628_v26 = vpop.permute.xlu1 %627 }
 0x342   : > { %v632_v31 = vsel %vm594_vm3, %v622_v22, %v628_v26 }
 0x343   : > { %v642_v39 = vmul.f32 %v632_v31, %v2878_v42 }
 0x345   : > { %v881_v37 = vpop.permute.xlu1 %880 }
 0x346   : > { %v891_v40 = vsel %vm594_vm3, %v881_v37, %v887_v28 }
 0x347   : > { %v901_v45 = vmul.f32 %v891_v40, %v2878_v42 }
 0x40a   : > { %v2191_v11 = vpop.f32.mrb[0].mxu1 }
 0x40b   : > { %v766_v13 = vmul.f32 0.25, %v2191_v11  ;;  %v756_v14 = vpop.f32.mrb[1].mxu1 }
 0x40c   : > { %v765_v16 = vmul.f32 0.25, %v756_v14 }
 0x40d   : > { %v2933_v17 = vadd.f32 %v766_v13, %v2925_v12 }
 0x40e   : > { %v767_v18 = vadd.f32 %v765_v16, %v2930_v15 }
 0x40f   : > { %v772_v19 = vsel %vm679_vm4, %v2933_v17, -inf }
 0x410   : > { %773 = vmax.xlane.f32.xlu1 %v772_v19  ;;  %v769_v20 = vsel %vm679_vm4, %v767_v18, -inf }
 0x411   : > { %770 = vmax.xlane.f32.xlu0 %v769_v20 }
 0x421   : > { %1112 = vrot.lane.b32.xlu1 %v2826_v30, %s2594_s30  ;;  %s2601_s30 = smov 32  }
 0x425   : > { %635 = vrot.lane.b32.xlu1 %v2856_v35, %s2599_s16 }
 0x427   : > { %633 = vrot.lane.b32.xlu0 %v2848_v34, %s2599_s16 }
 0x429   : > { %894 = vrot.lane.b32.xlu1 %v2856_v35, %s2600_s27 }
 0x42b   : > { %892 = vrot.lane.b32.xlu0 %v2848_v34, %s2600_s27 }
 0x42d   : > { %647 = vrot.lane.b32.xlu1 %v642_v39, %s2599_s16 }
 0x42f   : > { %645 = vrot.lane.b32.xlu0 %v641_v43, %s2599_s16 }
 0x431   : > { %906 = vrot.lane.b32.xlu1 %v901_v45, %s2600_s27 }
 0x433   : > { %904 = vrot.lane.b32.xlu0 %v900_v46, %s2600_s27 }
 0x435   : > { %1120 = vrot.lane.b32.xlu1 %v2856_v35, %s2601_s30 }
 0x437   : > { %1118 = vrot.lane.b32.xlu0 %v2848_v34, %s2601_s30 }
 0x43b   : > { %1130 = vrot.lane.b32.xlu0 %v1126_v49, %s2601_s30 }
 0x49d   : > { %v774_v51 = vpop.xlane.xlu1 %773 }
 0x49e   : > { %v771_v52 = vpop.xlane.xlu0 %770  ;;  %v776_v13 = vsub.f32 %v2933_v17, %v774_v51 }
 0x49f   : > { %v775_v53 = vsub.f32 %v767_v18, %v771_v52 }
 0x4a0   : > { %v779_v14 = vmul.f32 1.442695, %v776_v13 }
 0x4a1   : > { %v777_v54 = vmul.f32 1.442695, %v775_v53  ;;  %v1113_v55 = vpop.permute.xlu1 %1112 }
 0x4a2   : > { %v1117_v56 = vsel %vm594_vm3, %v1107_v50, %v1113_v55  ;;  %v634_v57 = vpop.permute.xlu0 %633 }
 0x4a3   : > { %2446 = vpow2.f32 %v777_v54  ;;  %v1127_v58 = vmul.f32 %v1117_v56, %v2878_v42  ;;  %v639_v1 = vmul.f32 %v634_v57, %v2819_v27 }
 0x4a4   : > { %2448 = vpow2.f32 %v779_v14 }
 0x4a5   : > { %1132 = vrot.lane.b32.xlu1 %v1127_v58, %s2601_s30  ;;  %v636_v61 = vpop.permute.xlu1 %635 }
 0x4a6   : > { %v893_v62 = vpop.permute.xlu0 %892  ;;  %v640_v4 = vmul.f32 %v636_v61, %v2826_v30 }
 0x4a7   : > { %v898_v17 = vmul.f32 %v893_v62, %v2819_v27 }
 0x4a9   : > { %v895_v63 = vpop.permute.xlu1 %894 }
 0x4aa   : > { %v646_v0 = vpop.permute.xlu0 %645  ;;  %v899_v26 = vmul.f32 %v895_v63, %v2826_v30 }
 0x4ab   : > { %v651_v7 = vadd.f32 %v646_v0, %v639_v1 }
 0x4ad   : > { %v2447_v5 = vpop.eup %2446  ;;  %v648_v6 = vpop.permute.xlu1 %647 }
 0x4ae   : > { %v652_v8 = vadd.f32 %v648_v6, %v640_v4  ;;  %v781_v10 = vsel %vm679_vm4, %v2447_v5, 0.0  ;;  %v905_v16 = vpop.permute.xlu0 %904  ;;  %v2449_v19 = vpop.eup %2448 }
 0x4af   : > { %782 = vadd.xlane.f32.xlu0 %v781_v10  ;;  %v784_v21 = vsel %vm679_vm4, %v2449_v19, 0.0  ;;  %v910_v24 = vadd.f32 %v905_v16, %v898_v17 }
 0x4b0   : > { %v2389_v11 = vpack.i.bf16 %v652_v8, %v651_v7 }
 0x4b1   : > { %v907_v25 = vpop.permute.xlu1 %906 }
 0x4b2   : > { %v1119_v18 = vpop.permute.xlu0 %1118  ;;  %v911_v28 = vadd.f32 %v907_v25, %v899_v26 }
 0x4b3   : > { %v1124_v22 = vmul.f32 %v1119_v18, %v2819_v27 }
 0x4b5   : > { %v1121_v31 = vpop.permute.xlu1 %1120 }
 0x4b6   : > { %v1131_v20 = vpop.permute.xlu0 %1130  ;;  %v1125_v37 = vmul.f32 %v1121_v31, %v2826_v30 }
 0x4b7   : > { %v1136_v23 = vadd.f32 %v1131_v20, %v1124_v22 }
 0x4c5   : > { %2385 = vrot.lane.b32.xlu0 %v2832_v32, %s2601_s30 }
 0x4c9   : > { %785 = vadd.xlane.f32.xlu1 %v784_v21  ;;  %2390 = vrot.lane.b32.xlu0 %v2389_v11, %s2602_s13 }
 0x4cd   : > { %1140 = vrot.lane.b32.xlu0 %v1136_v23, %s2603_s26 }
 0x4da   : > { %914 = vrot.lane.b32.xlu1 %v910_v24, %s2604_s29 }
 0x4de   : > { %916 = vrot.lane.b32.xlu1 %v911_v28, %s2604_s29 }
 0x517   : > { %v1133_v38 = vpop.permute.xlu1 %1132 }
 0x518   : > { %v1137_v39 = vadd.f32 %v1133_v38, %v1125_v37 }
 0x51a   : > { %1142 = vrot.lane.b32.xlu1 %v1137_v39, %s2603_s26 }
 0x51e   : > { %1346 = vrot.lane.b32.xlu1 %v2824_v29, %s2591_s19 }
 0x53c   : > { %v783_v40 = vpop.xlane.xlu0 %782 }
 0x53d   : > { %2450 = vrcp.f32 %v783_v40 }
 0x540   : > { %v2386_v41 = vpop.permute.xlu0 %2385 }
 0x541   : > { %v2388_v43 = vunpack.i.h.bf16 %v2386_v41  ;;  %v2387_v44 = vunpack.i.l.bf16 %v2386_v41 }
 0x543   : > { %v2279_v45 = vpack.c.bf16 %v2388_v43, %v2387_v44 }
 0x544   : > { %v2391_v29 = vpop.permute.xlu0 %2390 }
 0x545   : > { %2280 = vmatprep.subr.bf16.mxu1 %v2279_v45  ;;  %2290 = vmatprep.subr.bf16.mxu0 %v2279_v45  ;;  %v2393_v49 = vunpack.i.h.bf16 %v2391_v29  ;;  %v2392_v50 = vunpack.i.l.bf16 %v2391_v29 }
 0x546   : > { %2282 = vmatpush3.bf16.msra.mxu1 %v2279_v45  ;;  %2292 = vmatpush3.bf16.msra.mxu0 %v2279_v45 }
 0x547   : > { %v2451_v46 = vpop.eup %2450  ;;  %2285 = vmatprep.subr.msk.bf16.mxu1 %vm2900_vm5, %v2904_v60  ;;  %v2989_v53 = vpack.c.bf16 %v2393_v49, %v2392_v50 }
 0x548   : > { %v789_v47 = vmul.f32 %v2451_v46, %v2447_v5  ;;  %v1141_v56 = vpop.permute.xlu0 %1140 }
 0x54a   : > { %2196 = vmatprep.mubr.msk.f32.mxu1 %vm679_vm4, %v789_v47 }
 0x556   : > { %v786_v48 = vpop.xlane.xlu1 %785 }
 0x557   : > { %2452 = vrcp.f32 %v786_v48 }
 0x55a   : > { %v915_v54 = vpop.permute.xlu1 %914 }
 0x55e   : > { %v917_v55 = vpop.permute.xlu1 %916 }
 0x561   : > { %v2453_v51 = vpop.eup %2452 }
 0x562   : > { %v790_v52 = vmul.f32 %v2453_v51, %v2449_v19 }
 0x564   : > { %2197 = vmatmul.mubr.msk.f32.vlgmr.msra.gmra.mrb[2].mxu1 %vm679_vm4, %v790_v52 }
 0x565   : > { %2288 = vmatpush3.bf16.xpose.msk.msra.mxu1 %vm2900_vm5, %v2904_v60  ;;  %2203 = vmatprep.mubr.msk.f32.mxu1 %vm679_vm4, %v915_v54 }
 0x566   : > { %2295 = vmatprep.subr.msk.bf16.mxu1 %vm2900_vm5, %v2989_v53 }
 0x56c   : > { %2204 = vmatmul.mubr.msk.f32.vlgmr.msra.gmra.mrb[4].mxu1 %vm679_vm4, %v917_v55 }
 0x56d   : > { %2298 = vmatpush3.bf16.xpose.msk.msra.mxu1 %vm2900_vm5, %v2989_v53  ;;  %2217 = vmatprep.mubr.msk.f32.mxu1 %vm679_vm4, %v1141_v56 }
 0x58c   : > { %v1143_v57 = vpop.permute.xlu1 %1142 }
 0x58d   : > { %2218 = vmatmul.mubr.msk.f32.vlgmr.msra.gmra.mrb[6].mxu1 %vm679_vm4, %v1143_v57 }
 0x637   : > { %v3005_v60 = vpop.f32.mrb[2].mxu1 }
 0x638   : > { %v3007_v58 = vpop.f32.mrb[3].mxu1 }
 0x63f   : > { %v2205_v61 = vpop.f32.mrb[4].mxu1 }
 0x640   : > { %v998_v62 = vmul.f32 0.25, %v2205_v61  ;;  %v988_v63 = vpop.f32.mrb[5].mxu1 }
 0x641   : > { %v997_v0 = vmul.f32 0.25, %v988_v63 }
 0x642   : > { %v1000_v1 = vadd.f32 %v998_v62, %v2925_v12 }
 0x643   : > { %v999_v4 = vadd.f32 %v997_v0, %v2930_v15 }
 0x644   : > { %v1004_v5 = vsel %vm679_vm4, %v1000_v1, -inf }
 0x645   : > { %1005 = vmax.xlane.f32.xlu1 %v1004_v5  ;;  %v1001_v6 = vsel %vm679_vm4, %v999_v4, -inf }
 0x646   : > { %1002 = vmax.xlane.f32.xlu0 %v1001_v6 }
 0x656   : > { %1348 = vrot.lane.b32.xlu1 %v2836_v33, %s2591_s19  ;;  %v1347_v33 = vpop.permute.xlu1 %1346 }
 0x65a   : > { %1354 = vrot.lane.b32.xlu1 %v2826_v30, %s2596_s24 }
 0x65e   : > { %1362 = vrot.lane.b32.xlu1 %v2856_v35, %s2602_s13 }
 0x660   : > { %v2219_v7 = vpop.f32.mrb[6].mxu1 }
 0x661   : > { %v1234_v8 = vmul.f32 0.25, %v2219_v7  ;;  %v1224_v10 = vpop.f32.mrb[7].mxu1 }
 0x662   : > { %v1233_v11 = vmul.f32 0.25, %v1224_v10 }
 0x663   : > { %v1236_v13 = vadd.f32 %v1234_v8, %v2925_v12 }
 0x664   : > { %v1235_v16 = vadd.f32 %v1233_v11, %v2930_v15 }
 0x665   : > { %v1240_v14 = vsel %vm679_vm4, %v1236_v13, -inf }
 0x666   : > { %1241 = vmax.xlane.f32.xlu0 %v1240_v14  ;;  %v1237_v18 = vsel %vm679_vm4, %v1235_v16, -inf }
 0x66a   : > { %1238 = vmax.xlane.f32.xlu0 %v1237_v18 }
 0x680   : > { %1352 = vrot.lane.b32.xlu0 %v2819_v27, %s2596_s24 }
 0x684   : > { %1360 = vrot.lane.b32.xlu0 %v2848_v34, %s2602_s13 }
 0x6d2   : > { %v1006_v35 = vpop.xlane.xlu1 %1005 }
 0x6d3   : > { %v1008_v23 = vsub.f32 %v1000_v1, %v1006_v35  ;;  %v1003_v17 = vpop.xlane.xlu0 %1002 }
 0x6d5   : > { %v1011_v24 = vmul.f32 1.442695, %v1008_v23 }
 0x6d6   : > { %v1349_v19 = vpop.permute.xlu1 %1348 }
 0x6d7   : > { %2454 = vpow2.f32 %v1011_v24 }
 0x6da   : > { %v1355_v20 = vpop.permute.xlu1 %1354 }
 0x6db   : > { %v1359_v21 = vsel %vm594_vm3, %v1349_v19, %v1355_v20 }
 0x6dc   : > { %v1369_v22 = vmul.f32 %v1359_v21, %v2878_v42  ;;  %v1007_v42 = vsub.f32 %v999_v4, %v1003_v17 }
 0x6de   : > { %1374 = vrot.lane.b32.xlu1 %v1369_v22, %s2602_s13  ;;  %v1009_v39 = vmul.f32 1.442695, %v1007_v42  ;;  %v1363_v49 = vpop.permute.xlu1 %1362 }
 0x6df   : > { %v1367_v50 = vmul.f32 %v1363_v49, %v2826_v30  ;;  %v2421_v49 = vld [vmem:[%s2749_s23 + $0x18] sm:$0xff]  }
 0x6e0   : > { %2456 = vpow2.f32 %v1009_v39 }
 0x6e1   : > { %v2455_v37 = vpop.eup %2454 }
 0x6e2   : > { %v1016_v38 = vsel %vm679_vm4, %v2455_v37, 0.0 }
 0x6ea   : > { %v2457_v45 = vpop.eup %2456 }
 0x6f3   : > { %v1242_v25 = vpop.xlane.xlu0 %1241 }
 0x6f4   : > { %v1244_v41 = vsub.f32 %v1236_v13, %v1242_v25 }
 0x6f6   : > { %v1247_v44 = vmul.f32 1.442695, %v1244_v41 }
 0x6f7   : > { %v1239_v26 = vpop.xlane.xlu0 %1238 }
 0x6f8   : > { %v1243_v40 = vsub.f32 %v1235_v16, %v1239_v26 }
 0x6fa   : > { %v1245_v43 = vmul.f32 1.442695, %v1243_v40 }
 0x6fb   : > { %v1353_v28 = vpop.permute.xlu0 %1352 }
 0x6fc   : > { %v1358_v31 = vsel %vm594_vm3, %v1347_v33, %v1353_v28  ;;  %2458 = vpow2.f32 %v1245_v43 }
 0x6fd   : > { %v1368_v34 = vmul.f32 %v1358_v31, %v2870_v36  ;;  %2460 = vpow2.f32 %v1247_v44  ;;  %v1013_v36 = vsel %vm679_vm4, %v2457_v45, 0.0 }
 0x6ff   : > { %1372 = vrot.lane.b32.xlu0 %v1368_v34, %s2602_s13  ;;  %v1361_v52 = vpop.permute.xlu0 %1360 }
 0x700   : > { %v1366_v54 = vmul.f32 %v1361_v52, %v2819_v27 }
 0x702   : > { %1017 = vadd.xlane.f32.xlu1 %v1016_v38 }
 0x706   : > { %v2459_v46 = vpop.eup %2458 }
 0x707   : > { %v1249_v47 = vsel %vm679_vm4, %v2459_v46, 0.0  ;;  %v2461_v48 = vpop.eup %2460 }
 0x708   : > { %v1252_v29 = vsel %vm679_vm4, %v2461_v48, 0.0 }
 0x713   : > { %2395 = vrot.lane.b32.xlu1 %v2832_v32, %s2600_s27 }
 0x71e   : > { %1014 = vadd.xlane.f32.xlu0 %v1013_v36 }
 0x722   : > { %1250 = vadd.xlane.f32.xlu0 %v1249_v47  ;;  %v2418_v47 = vld [vmem:[%s2749_s23] sm:$0xff]  }
 0x726   : > { %1253 = vadd.xlane.f32.xlu0 %v1252_v29  ;;  %v2420_v29 = vld [vmem:[%s2749_s23 + $0x10] sm:$0xff]  }
 0x750   : > { %v1375_v51 = vpop.permute.xlu1 %1374 }
 0x751   : > { %v1379_v32 = vadd.f32 %v1375_v51, %v1367_v50 }
 0x753   : > { %1384 = vrot.lane.b32.xlu1 %v1379_v32, %s2599_s16 }
 0x771   : > { %v1373_v55 = vpop.permute.xlu0 %1372 }
 0x772   : > { %v1378_v56 = vadd.f32 %v1373_v55, %v1366_v54 }
 0x774   : > { %1382 = vrot.lane.b32.xlu0 %v1378_v56, %s2599_s16 }
 0x78f   : > { %v1018_v57 = vpop.xlane.xlu1 %1017 }
 0x790   : > { %2462 = vrcp.f32 %v1018_v57 }
 0x793   : > { %v2396_v61 = vpop.permute.xlu1 %2395 }
 0x794   : > { %v2398_v62 = vunpack.i.h.bf16 %v2396_v61  ;;  %v2397_v63 = vunpack.i.l.bf16 %v2396_v61 }
 0x796   : > { %v2299_v0 = vpack.c.bf16 %v2398_v62, %v2397_v63 }
 0x798   : > { %2300 = vmatprep.subr.bf16.mxu0 %v2299_v0  ;;  %2310 = vmatprep.subr.bf16.mxu1 %v2299_v0 }
 0x799   : > { %2312 = vmatpush3.bf16.msra.mxu1 %v2299_v0 }
 0x79a   : > { %2253 = vmatprep.subr.bf16.mxu1 %v2589_v9  ;;  %v2463_v4 = vpop.eup %2462 }
 0x79b   : > { %v1022_v7 = vmul.f32 %v2463_v4, %v2455_v37 }
 0x7ab   : > { %v1015_v30 = vpop.xlane.xlu0 %1014 }
 0x7ac   : > { %2464 = vrcp.f32 %v1015_v30 }
 0x7af   : > { %v1251_v1 = vpop.xlane.xlu0 %1250 }
 0x7b0   : > { %2466 = vrcp.f32 %v1251_v1 }
 0x7b3   : > { %v1254_v27 = vpop.xlane.xlu0 %1253 }
 0x7b4   : > { %2468 = vrcp.f32 %v1254_v27 }
 0x7b6   : > { %v2465_v5 = vpop.eup %2464 }
 0x7b7   : > { %v1021_v6 = vmul.f32 %v2465_v5, %v2457_v45 }
 0x7b9   : > { %2210 = vmatprep.mubr.msk.f32.mxu0 %vm679_vm4, %v1021_v6 }
 0x7ba   : > { %v2467_v8 = vpop.eup %2466  ;;  %2211 = vmatmul.mubr.msk.f32.vlgmr.msra.gmra.mrb[4].mxu0 %vm679_vm4, %v1022_v7 }
 0x7bb   : > { %2302 = vmatpush3.bf16.msra.mxu0 %v2299_v0  ;;  %v1257_v10 = vmul.f32 %v2467_v8, %v2459_v46 }
 0x7bc   : > { %2305 = vmatprep.subr.msk.bf16.mxu0 %vm2900_vm5, %v2989_v53 }
 0x7bd   : > { %2224 = vmatprep.mubr.msk.f32.mxu0 %vm679_vm4, %v1257_v10 }
 0x7be   : > { %v2469_v11 = vpop.eup %2468 }
 0x7bf   : > { %v1258_v13 = vmul.f32 %v2469_v11, %v2461_v48  ;;  %v2419_v48 = vld [vmem:[%s2749_s23 + $0x8] sm:$0xff]  }
 0x7c1   : > { %2225 = vmatmul.mubr.msk.f32.vlgmr.msra.gmra.mrb[6].mxu0 %vm679_vm4, %v1258_v13 }
 0x7c4   : > { %2308 = vmatpush3.bf16.xpose.msk.msra.mxu0 %vm2900_vm5, %v2989_v53 }
 0x7c5   : > { %2241 = vmatprep.subr.bf16.mxu0 %v2589_v9  ;;  %v1385_v16 = vpop.permute.xlu1 %1384 }
 0x7e6   : > { %v1383_v14 = vpop.permute.xlu0 %1382 }
 0x7e7   : > { %2231 = vmatprep.mubr.msk.f32.mxu0 %vm679_vm4, %v1383_v14 }
 0x7e8   : > { %2232 = vmatmul.mubr.msk.f32.vlgmr.msra.gmra.mrb[8].mxu0 %vm679_vm4, %v1385_v16 }
 0x7e9   : > { %2249 = vmatprep.mubr.msk.bf16.mxu0 %vm2590_vm2, %v2589_v9  ;;  %2242 = vmatpush3.bf16.msra.mxu0 %v2418_v47  ;;  %v2441_v47 = vld [vmem:[%s2782_s11 + $0x38] sm:$0xff]  }
 0x7ea   : > { %2243 = vmatprep.subr.bf16.mxu0 %v2589_v9 }
 0x7ed   : > { %2244 = vmatpush3.bf16.msra.mxu0 %v2419_v48 }
 0x7ee   : > { %2245 = vmatprep.subr.bf16.mxu0 %v2589_v9 }
 0x7f1   : > { %2246 = vmatpush3.bf16.msra.mxu0 %v2420_v29 }
 0x7f2   : > { %2247 = vmatprep.subr.bf16.mxu0 %v2589_v9 }
 0x7f5   : > { %2248 = vmatpush3.bf16.msra.mxu0 %v2421_v49 }
 0x88d   : > { %v2212_v18 = vpop.f32.mrb[4].mxu0 }
 0x88e   : > { %v1095_v33 = vpop.f32.mrb[5].mxu0 }
 0x88f   : > { %v2399_v35 = vpack.i.bf16 %v2212_v18, %v1095_v33  ;;  %v2424_v33 = vld [vmem:[%s2777_s6 + $0x4] ss:$8 sps:$4 sm:$0xff]  }
 0x890   : > { %1760 = vmatprep.subr.bf16.mxu0 %v2424_v33 }
 0x894   : > { %v2226_v19 = vpop.f32.mrb[6].mxu0 }
 0x895   : > { %v1337_v20 = vpop.f32.mrb[7].mxu0 }
 0x896   : > { %v2404_v21 = vpack.i.bf16 %v2226_v19, %v1337_v20  ;;  %v2425_v19 = vld [vmem:[%s2777_s6 + $0x10] ss:$8 sps:$4 sm:$0xff]   ;;  %v2430_v20 = vld [vmem:[%s2777_s6 + $0x24] ss:$8 sps:$4 sm:$0xff]  }
 0x8bb   : > { %v2233_v22 = vpop.f32.mrb[8].mxu0 }
 0x8bc   : > { %v1466_v59 = vmul.f32 0.25, %v2233_v22  ;;  %v1456_v53 = vpop.f32.mrb[9].mxu0  ;;  %v2433_v22 = vld [vmem:[%s2777_s6 + $0x34] ss:$8 sps:$4 sm:$0xff]  }
 0x8bd   : > { %v1465_v23 = vmul.f32 0.25, %v1456_v53  ;;  %v2605_v53 = vmov 0  }
 0x8be   : > { %v1468_v17 = vadd.f32 %v1466_v59, %v2925_v12  ;;  %v2431_v59 = vld [vmem:[%s2777_s6 + $0x30] ss:$8 sps:$4 sm:$0xff]  }
 0x8bf   : > { %v1467_v24 = vadd.f32 %v1465_v23, %v2930_v15 }
 0x8c0   : > { %v1472_v25 = vsel %vm679_vm4, %v1468_v17, -inf }
 0x8c1   : > { %1473 = vmax.xlane.f32.xlu0 %v1472_v25  ;;  %v1469_v26 = vsel %vm679_vm4, %v1467_v24, -inf }
 0x8c2   : > { %1470 = vmax.xlane.f32.xlu1 %v1469_v26 }
 0x94e   : > { %v1474_v28 = vpop.xlane.xlu0 %1473 }
 0x94f   : > { %v1476_v31 = vsub.f32 %v1468_v17, %v1474_v28  ;;  %v1471_v34 = vpop.xlane.xlu1 %1470 }
 0x950   : > { %v1475_v37 = vsub.f32 %v1467_v24, %v1471_v34 }
 0x951   : > { %v1479_v38 = vmul.f32 1.442695, %v1476_v31 }
 0x952   : > { %v1477_v42 = vmul.f32 1.442695, %v1475_v37 }
 0x953   : > { %2470 = vpow2.f32 %v1479_v38  ;;  %v2094_v38 = vld [vmem:[%s443_s20] ss:$0 sm:$0xff] }
 0x954   : > { %2472 = vpow2.f32 %v1477_v42 }
 0x95d   : > { %v2471_v39 = vpop.eup %2470 }
 0x95e   : > { %v2473_v40 = vpop.eup %2472  ;;  %v1484_v12 = vsel %vm679_vm4, %v2471_v39, 0.0 }
 0x95f   : > { %1485 = vadd.xlane.f32.xlu1 %v1484_v12  ;;  %v1481_v15 = vsel %vm679_vm4, %v2473_v40, 0.0 }
 0x960   : > { %1482 = vadd.xlane.f32.xlu0 %v1481_v15  ;;  %v2434_v15 = vld [vmem:[%s2782_s11] sm:$0xff]  }
 0x970   : > { %2405 = vrot.lane.b32.xlu1 %v2404_v21, %s2601_s30  ;;  %v2428_v21 = vld [vmem:[%s2777_s6 + $0x20] ss:$8 sps:$4 sm:$0xff]  }
 0x976   : > { %2400 = vrot.lane.b32.xlu0 %v2399_v35, %s2600_s27  ;;  %v2427_v35 = vld [vmem:[%s2777_s6 + $0x14] ss:$8 sps:$4 sm:$0xff]  }
 0x9ec   : > { %v1486_v41 = vpop.xlane.xlu1 %1485 }
 0x9ed   : > { %2474 = vrcp.f32 %v1486_v41  ;;  %v1483_v43 = vpop.xlane.xlu0 %1482  ;;  %v2435_v41 = vld [vmem:[%s2782_s11 + $0x8] sm:$0xff]  }
 0x9ee   : > { %2476 = vrcp.f32 %v1483_v43  ;;  %v2436_v43 = vld [vmem:[%s2782_s11 + $0x10] sm:$0xff]  }
 0x9f0   : > { %v2406_v56 = vpop.permute.xlu1 %2405 }
 0x9f1   : > { %v2401_v52 = vpop.permute.xlu0 %2400  ;;  %v2408_v62 = vunpack.i.h.bf16 %v2406_v56  ;;  %v2407_v63 = vunpack.i.l.bf16 %v2406_v56 }
 0x9f2   : > { %v2403_v54 = vunpack.i.h.bf16 %v2401_v52  ;;  %v2402_v55 = vunpack.i.l.bf16 %v2401_v52 }
 0x9f4   : > { %v1597_v57 = vsel %vm679_vm4, %v3005_v60, %v2403_v54  ;;  %v1596_v61 = vsel %vm679_vm4, %v3007_v58, %v2402_v55 }
 0x9f5   : > { %v1599_v27 = vsel %vm1598_vm6, %v1596_v61, %v2407_v63  ;;  %v1600_v4 = vsel %vm1598_vm6, %v1597_v57, %v2408_v62 }
 0x9f7   : > { %v2475_v44 = vpop.eup %2474 }
 0x9f8   : > { %v2477_v45 = vpop.eup %2476  ;;  %v1490_v46 = vmul.f32 %v2475_v44, %v2471_v39  ;;  %v2437_v44 = vld [vmem:[%s2782_s11 + $0x18] sm:$0xff]  }
 0x9f9   : > { %v1489_v36 = vmul.f32 %v2477_v45, %v2473_v40  ;;  %v2438_v45 = vld [vmem:[%s2782_s11 + $0x20] sm:$0xff]  }
 0x9fb   : > { %2238 = vmatprep.mubr.msk.f32.mxu1 %vm679_vm4, %v1489_v36  ;;  %v2439_v36 = vld [vmem:[%s2782_s11 + $0x28] sm:$0xff]  }
 0x9fc   : > { %2239 = vmatmul.mubr.msk.f32.vlgmr.msra.gmra.mrb[8].mxu1 %vm679_vm4, %v1490_v46  ;;  %v2440_v46 = vld [vmem:[%s2782_s11 + $0x30] sm:$0xff]   ;;  %s1937_s11 = sshll.u32 %s2606_s28, 4  ;;  %s1938_s11 = int_to_ptr.vmem [resolvable:$true] %s1937_s11 }
 0x9fd   : > { %2269 = vmatprep.mubr.msk.bf16.mxu1 %vm2590_vm2, %v2589_v9  ;;  %2254 = vmatpush3.bf16.msra.mxu1 %v2434_v15  ;;  %s2520_s20 = scalar_lea.vmem %s1938_s11, 256  ;;  %p2527_p10 = scmp.lt.s32.totalorder %s1938_s11, %s1938_s11 }
 0x9fe   : > { %2255 = vmatprep.subr.bf16.mxu1 %v2589_v9  ;;  %p2521_p4 = scmp.ne.s32.totalorder %s1938_s11, %s2520_s20  ;;  %p2528_p12 = scmp.lt.s32.totalorder %s2520_s20, %s2520_s20 }
 0xa00   : > { %p2522_p5 = pnand %p2521_p4, %p2324_p8  ;;  %p2529_p0 = por %p2528_p12, %p2527_p10 }
 0xa01   : > { %2256 = vmatpush3.bf16.msra.mxu1 %v2435_v41 }
 0xa02   : > { %2257 = vmatprep.subr.bf16.mxu1 %v2589_v9  ;;  %p2523_p6 = pneg %p2522_p5 }
 0xa04   : > { %p2530_p1 = pnand %p2529_p0, %p2523_p6 }
 0xa05   : > { %2258 = vmatpush3.bf16.msra.mxu1 %v2436_v43 }
 0xa06   : > { %2259 = vmatprep.subr.bf16.mxu1 %v2589_v9 }
 0xa09   : > { %2260 = vmatpush3.bf16.msra.mxu1 %v2437_v44 }
 0xa0a   : > { %2261 = vmatprep.subr.bf16.mxu1 %v2589_v9 }
 0xa0d   : > { %2262 = vmatpush3.bf16.msra.mxu1 %v2438_v45 }
 0xa0e   : > { %2263 = vmatprep.subr.bf16.mxu1 %v2589_v9 }
 0xa11   : > { %2264 = vmatpush3.bf16.msra.mxu1 %v2439_v36 }
 0xa12   : > { %2265 = vmatprep.subr.bf16.mxu1 %v2589_v9 }
 0xa15   : > { %2266 = vmatpush3.bf16.msra.mxu1 %v2440_v46 }
 0xa16   : > { %2267 = vmatprep.subr.bf16.mxu1 %v2589_v9 }
 0xa19   : > { %2268 = vmatpush3.bf16.msra.mxu1 %v2441_v47 }
 0xacf   : > { %v2240_v50 = vpop.f32.mrb[8].mxu1 }
 0xad0   : > { %v1563_v51 = vpop.f32.mrb[9].mxu1 }
 0xad1   : > { %v2409_v32 = vpack.i.bf16 %v2240_v50, %v1563_v51 }
 0xad3   : > { %2410 = vrot.lane.b32.xlu1 %v2409_v32, %s2602_s13 }
 0xb45   : > { %v2411_v0 = vpop.permute.xlu1 %2410 }
 0xb46   : > { %v2413_v30 = vunpack.i.h.bf16 %v2411_v0  ;;  %v2412_v1 = vunpack.i.l.bf16 %v2411_v0 }
 0xb48   : > { %v1602_v5 = vsel %vm1601_vm7, %v1599_v27, %v2412_v1  ;;  %v1603_v6 = vsel %vm1601_vm7, %v1600_v4, %v2413_v30 }
 0xb49   : > { %v1604_v7 = vpack.c.bf16 %v1603_v6, %v1602_v5 }
 0xb4b   : > { %2250 = vmatmul.mubr.msk.bf16.vlgmr.msra.gmra.mrb[12].mxu0 %vm475_vm1, %v1604_v7 }
 0xb4c   : > { %1792 = vmatprep.mubr.bf16.mxu0 %v2605_v53 }
 0xc1e   : > { %v1674_v60 = vpop.f32.mrb[12].mxu0 }
 0xc1f   : > { %v3085_v58 = vadd.f32 %v1674_v60, %v2791_v2  ;;  %v2251_v8 = vpop.f32.mrb[13].mxu0 }
 0xc20   : > { %v1677_v10 = vpop.f32.mrb[14].mxu0 }
 0xc21   : > { %v3088_v11 = vadd.f32 %v1677_v10, %v2793_v3  ;;  %v2252_v13 = vpop.f32.mrb[15].mxu0  ;;  %v1684_v14 = vmul.f32 %v3085_v58, %v3085_v58  ;;  %v2422_v3 = vld [vmem:[%s2777_s6] ss:$8 sps:$4 sm:$0xff]  }
 0xc22   : > { %1761 = vmatpush1.bf16.msra.mxu0 %v2422_v3 }
 0xc23   : > { %v1686_v16 = vsel %vm475_vm1, %v1684_v14, 0.0  ;;  %v1685_v18 = vmul.f32 %v3088_v11, %v3088_v11  ;;  %1762 = vmatprep.subr.bf16.mxu0 %v2427_v35 }
 0xc24   : > { %1687 = vadd.xlane.f32.xlu0 %v1686_v16 }
 0xc25   : > { %v1689_v2 = vsel %vm475_vm1, %v1685_v18, 0.0 }
 0xc26   : > { %1690 = vadd.xlane.f32.xlu1 %v1689_v2  ;;  %1763 = vmatpush1.bf16.msra.mxu0 %v2425_v19 }
 0xc27   : > { %1764 = vmatprep.subr.bf16.mxu0 %v2430_v20 }
 0xc2a   : > { %1765 = vmatpush1.bf16.msra.mxu0 %v2428_v21 }
 0xc2b   : > { %1766 = vmatprep.subr.bf16.mxu0 %v2433_v22 }
 0xc2e   : > { %1767 = vmatpush1.bf16.msra.mxu0 %v2431_v59 }
 0xcb1   : > { %v1688_v23 = vpop.xlane.xlu0 %1687 }
 0xcb2   : > { %v1692_v17 = vmul.f32 0.015625, %v1688_v23 }
 0xcb3   : > { %v1691_v24 = vpop.xlane.xlu1 %1690 }
 0xcb4   : > { %v1694_v25 = vadd.f32 1e-05, %v1692_v17  ;;  %v1693_v26 = vmul.f32 0.015625, %v1691_v24 }
 0xcb6   : > { %2478 = vrsqrt.f32 %v1694_v25  ;;  %v1695_v28 = vadd.f32 1e-05, %v1693_v26 }
 0xcb8   : > { %2480 = vrsqrt.f32 %v1695_v28 }
 0xcc0   : > { %v2479_v31 = vpop.eup %2478 }
 0xcc1   : > { %v1698_v34 = vmul.f32 %v2479_v31, %v3085_v58 }
 0xcc2   : > { %v2481_v37 = vpop.eup %2480 }
 0xcc3   : > { %v1699_v42 = vmul.f32 %v2481_v37, %v3088_v11  ;;  %v1706_v39 = vmul.f32 %v2094_v38, %v1698_v34 }
 0xcc5   : > { %v1707_v40 = vmul.f32 %v2094_v38, %v1699_v42 }
 0xcc7   : > { %v1708_v12 = vpack.c.bf16 %v1707_v40, %v1706_v39 }
 0xcc9   : > { %2103 = vmatmul.mubr.msk.bf16.vlgmr.msra.gmra.mrb[16].mxu0 %vm475_vm1, %v1708_v12 }
 0xd9c   : > { %v1794_v48 = vpop.f32.mrb[16].mxu0 }
 0xd9d   : > { %v2104_v29 = vmul.f32 -1.442695, %v1794_v48  ;;  %v1796_v49 = vpop.f32.mrb[17].mxu0 }
 0xd9e   : > { %v1798_v50 = vpop.f32.mrb[18].mxu0 }
 0xd9f   : > { %2482 = vpow2.f32 %v2104_v29  ;;  %v2105_v51 = vmul.f32 -1.442695, %v1798_v50  ;;  %v1800_v32 = vpop.f32.mrb[19].mxu0 }
 0xda1   : > { %2484 = vpow2.f32 %v2105_v51 }
 0xda9   : > { %v2483_v52 = vpop.eup %2482 }
 0xdaa   : > { %v1809_v54 = vadd.f32 1.0, %v2483_v52 }
 0xdab   : > { %v2485_v55 = vpop.eup %2484 }
 0xdac   : > { %2486 = vrcp.f32 %v1809_v54  ;;  %v1810_v56 = vadd.f32 1.0, %v2485_v55 }
 0xdae   : > { %2488 = vrcp.f32 %v1810_v56 }
 0xdb6   : > { %v2487_v57 = vpop.eup %2486 }
 0xdb7   : > { %v1815_v61 = vmul.f32 %v2487_v57, %v1794_v48 }
 0xdb8   : > { %v2489_v9 = vpop.eup %2488 }
 0xdb9   : > { %v1817_v62 = vmul.f32 %v1815_v61, %v1796_v49  ;;  %v1816_v63 = vmul.f32 %v2489_v9, %v1798_v50 }
 0xdbb   : > { %v1818_v0 = vmul.f32 %v1816_v63, %v1800_v32 }
 0xdbd   : > { %v1819_v30 = vpack.c.bf16 %v1818_v0, %v1817_v62 }
 0xdbf   : > { %2270 = vmatmul.mubr.bf16.vlgmr.msra.gmra.mrb[12].mxu1 %v1819_v30 }
 0xe92   : > { %v1918_v1 = vpop.f32.mrb[12].mxu1 }
 0xe93   : > { %v1925_v27 = vadd.f32 %v1918_v1, %v3085_v58  ;;  %v2271_v4 = vpop.f32.mrb[13].mxu1 }
 0xe94   : > { %v1921_v5 = vpop.f32.mrb[14].mxu1 }
 0xe95   : > { %1927 = vst.msk [vmem:[#allocation2] sm:$0xff] %vm475_vm1, %v1925_v27  ;;  %1929 = vst.msk [vmem:[#allocation6] sm:$0xff] %vm475_vm1, %v1925_v27  ;;  %v1926_v6 = vadd.f32 %v1921_v5, %v3088_v11  ;;  %v2272_v7 = vpop.f32.mrb[15].mxu1 }
 0xe97   : > { %1928 = vst.msk [vmem:[#allocation2 + $0x8] sm:$0xff] %vm475_vm1, %v1926_v6  ;;  %1930 = vst.msk [vmem:[#allocation6 + $0x8] sm:$0xff] %vm475_vm1, %v1926_v6 }
 0xe98   : > { %2533 = shalt.err (!%p2530_p1)
}
 0xe99   : > { %s2534_s25 = scalar_lea.hbm %s3180_s10, 256 }
 0xe9a   : > { %p2535_p2 = scmp.ne.s32.totalorder %s3180_s10, %s2534_s25  ;;  %p2540_p3 = scmp.lt.u32.totalorder %s2534_s25, %s3180_s10 }
 0xe9c   : > { %p2536_p11 = pnand %p2535_p2, %p2324_p8 }
 0xe9e   : > { %p2537_p13 = pneg %p2536_p11 }
 0xea0   : > { %p2542_p9 = pnand %p2540_p3, %p2537_p13 }
 0xea2   : > { %2545 = shalt.err (!%p2542_p9)
}
 0xea3   : > { %s2607_s13 = smov 128  }
 0xea4   : > { %2316 = dma.vmem_to_hbm [thread:$0]  (%p2324_p8), %s1938_s11, 256, %s3180_s10, [#allocation5], %s2607_s13, %s2607_s13, %s2597_s22  }
 0xea5   : > { %2567 = dma.done.wait (%p2324_p8), [#allocation5], 256  }
 0xea6   : > { %2569 = vsyncadd (%p2324_p8), [#allocation5], 4294967040 }
 0xea7 PF: > { %p21_p7 = scmp.ge.s32.totalorder %s2685_s18, 26   ;;  %s3189_s13 = smov %s2576_s14 }
 0xea8   : > { %s3190_s14 = smov %s2580_s15  ;;  %s3191_s15 = smov %s2695_s21 }
 0xea9   : > { %s3192_s16 = smov %s2685_s18  ;;  %23 = sbr.rel (!%p21_p7) target bundleno = 6 (0x6), region = 116 }
 0xeb0   :  { %1953 = vsyncpa [#allocation4], 1 }
 0xeb1   :  { %1955 = vsyncpa [#allocation4 + $0x1], 1 }
 0xeb2   :  { %1956 = vsyncpa [#allocation5], 1 }
 0xeb3   :  { %1958 = vsyncpa [#allocation5 + $0x1], 1 }

</bundles_post_ra>
